<compile_context>
chip_gen: v7x
topology: tpu7x:2x2x1
jax: 0.10.0
libtpu: 0.0.40
codegen_flags: <defaults>
</compile_context>

<pallas_src>
import functools

import jax
import jax.numpy as jnp
from jax import lax
from jax.experimental import pallas as pl
from jax.experimental.pallas import tpu as pltpu


# -----------------------------------------------------------------------------
# Small helpers
# -----------------------------------------------------------------------------
def _round_up(x, m):
    return ((x + m - 1) // m) * m


def _pick_tile(n, item_bytes, budget_bytes=4 << 20, align=8):
    """Largest divisor of `n` (multiple of `align`, or n itself) fitting budget."""
    if n * item_bytes <= budget_bytes:
        return n
    best = None
    d = align
    while d <= n:
        if n % d == 0 and d * item_bytes <= budget_bytes:
            best = d
        d += align
    return best if best is not None else align


def _pad_axis(w, axis, new):
    if w.shape[axis] == new:
        return w
    pad = [(0, 0)] * w.ndim
    pad[axis] = (0, new - w.shape[axis])
    return jnp.pad(w, pad)


def _pad_gate_axis(w, H, H_p):
    """Pad a trailing 4H gate axis to 4*H_p so each [i,f,g,o] gate block starts
    at a multiple of H_p (lane-aligned slicing inside the kernel)."""
    if H == H_p:
        return w
    lead = w.shape[:-1]
    w4 = w.reshape(lead + (4, H))
    w4 = jnp.pad(w4, [(0, 0)] * len(lead) + [(0, 0), (0, H_p - H)])
    return w4.reshape(lead + (4 * H_p,))


# -----------------------------------------------------------------------------
# Kernel 1: lane-dense matmul + bias over the flattened sequence.
# Used for (a) hoisted LSTM input projections and (b) the output FC.
# -----------------------------------------------------------------------------
def _matmul_bias_kernel(x_ref, w_ref, b_ref, o_ref, *, mxu_dtype):
    x = x_ref[...].astype(mxu_dtype)
    w = w_ref[...].astype(mxu_dtype)
    acc = jnp.dot(x, w, preferred_element_type=jnp.float32)
    o_ref[...] = (acc + b_ref[...]).astype(o_ref.dtype)


def matmul_bias(x, w, b, *, mxu_dtype=jnp.float32):
    """y = x @ w + b.  x: (M, K), w: (K, N), b: (1, N).  M multiple of 8."""
    M, K = x.shape
    N = w.shape[1]
    tm = _pick_tile(M, (K + N) * 4)
    return pl.pallas_call(
        functools.partial(_matmul_bias_kernel, mxu_dtype=mxu_dtype),
        grid_spec=pltpu.PrefetchScalarGridSpec(
            num_scalar_prefetch=0,
            grid=(M // tm,),
            in_specs=[
                pl.BlockSpec((tm, K), lambda i: (i, 0)),
                pl.BlockSpec((K, N), lambda i: (0, 0)),
                pl.BlockSpec((1, N), lambda i: (0, 0)),
            ],
            out_specs=pl.BlockSpec((tm, N), lambda i: (i, 0)),
        ),
        out_shape=jax.ShapeDtypeStruct((M, N), jnp.float32),
        compiler_params=pltpu.CompilerParams(
            dimension_semantics=("parallel",)),
    )(x, w, b)


# -----------------------------------------------------------------------------
# Kernel 2: LSTM time recurrence.  Grid over T-chunks ("arbitrary" = serial);
# each chunk runs an in-kernel fori_loop over its timesteps with h/c carried in
# vregs and persisted across chunks in VMEM scratch.  Only h @ W_hh^T remains
# on the serial critical path (input projection was hoisted).
# -----------------------------------------------------------------------------
def _lstm_rec_kernel(zin_ref, whh_ref, h0_ref, c0_ref,
                     hseq_ref, hn_ref, cn_ref,
                     h_sc, c_sc, *, mxu_dtype):
    t_chunk = zin_ref.shape[0]
    Hp = h_sc.shape[-1]

    @pl.when(pl.program_id(0) == 0)
    def _():
        h_sc[...] = h0_ref[...]
        c_sc[...] = c0_ref[...]

    def step(i, carry):
        h, c = carry
        # Gate pre-activations: precomputed input part + recurrent part.
        z = zin_ref[i] + jnp.dot(h.astype(mxu_dtype),
                                 whh_ref[...].astype(mxu_dtype),
                                 preferred_element_type=jnp.float32)  # (B, 4Hp)
        # PyTorch gate order [i, f, g, o]; Hp-wide slots => lane-aligned slices.
        i_g = jax.nn.sigmoid(z[:, 0 * Hp:1 * Hp])
        f_g = jax.nn.sigmoid(z[:, 1 * Hp:2 * Hp])
        g_g = jnp.tanh(z[:, 2 * Hp:3 * Hp])
        o_g = jax.nn.sigmoid(z[:, 3 * Hp:4 * Hp])
        c_new = f_g * c + i_g * g_g
        h_new = o_g * jnp.tanh(c_new)
        hseq_ref[i] = h_new.astype(hseq_ref.dtype)
        return h_new, c_new

    h_fin, c_fin = lax.fori_loop(0, t_chunk, step,
                                 (h_sc[...], c_sc[...]),
                                 unroll=min(t_chunk, 8))
    h_sc[...] = h_fin
    c_sc[...] = c_fin
    # Constant-index output blocks: final HBM writeback happens at grid end.
    hn_ref[...] = h_fin.astype(hn_ref.dtype)
    cn_ref[...] = c_fin.astype(cn_ref.dtype)


def lstm_recurrence(z_in, whh_t, h0, c0, *, mxu_dtype=jnp.float32):
    """z_in: (T, B, 4H) = x @ W_ih^T + b_ih + b_hh (precomputed).
    whh_t: (H, 4H).  h0/c0: (B, H).  Returns (h_seq, h_n, c_n)."""
    T, B, fourH = z_in.shape
    H = whh_t.shape[0]
    t_chunk = _pick_tile(T, B * (fourH + H) * 4, align=1)
    out_shapes = (
        jax.ShapeDtypeStruct((T, B, H), jnp.float32),
        jax.ShapeDtypeStruct((B, H), jnp.float32),
        jax.ShapeDtypeStruct((B, H), jnp.float32),
    )
    return pl.pallas_call(
        functools.partial(_lstm_rec_kernel, mxu_dtype=mxu_dtype),
        grid_spec=pltpu.PrefetchScalarGridSpec(
            num_scalar_prefetch=0,
            grid=(T // t_chunk,),
            in_specs=[
                pl.BlockSpec((t_chunk, B, fourH), lambda t: (t, 0, 0)),  # Z_in chunk
                pl.BlockSpec((H, fourH), lambda t: (0, 0)),              # W_hh^T
                pl.BlockSpec((B, H), lambda t: (0, 0)),                  # h0
                pl.BlockSpec((B, H), lambda t: (0, 0)),                  # c0
            ],
            out_specs=[
                pl.BlockSpec((t_chunk, B, H), lambda t: (t, 0, 0)),      # h_seq
                pl.BlockSpec((B, H), lambda t: (0, 0)),                  # h_n
                pl.BlockSpec((B, H), lambda t: (0, 0)),                  # c_n
            ],
            scratch_shapes=[
                pltpu.VMEM((B, H), jnp.float32),                         # h state
                pltpu.VMEM((B, H), jnp.float32),                         # c state
            ],
        ),
        out_shape=out_shapes,
        compiler_params=pltpu.CompilerParams(
            dimension_semantics=("arbitrary",)),   # time axis is sequential
    )(z_in, whh_t, h0, c0)


# -----------------------------------------------------------------------------
# Parameter init (same shapes as the nn.Module, deterministic).
# -----------------------------------------------------------------------------
def init_params(key, embed_dim, input_dim, hidden_dim, layer_num, output_dim):
    O = output_dim + 1
    keys = jax.random.split(key, 2 + 4 * layer_num + 2)
    k = iter(keys)
    params = {}
    emb = jax.random.normal(next(k), (input_dim, embed_dim), jnp.float32) * 0.1
    emb = emb.at[input_dim - 1].set(0.0)      # padding_idx = input_dim - 1
    params["embedding"] = emb
    for l in range(layer_num):
        in_dim = embed_dim if l == 0 else hidden_dim
        params[f"w_ih_{l}"] = jax.random.normal(next(k), (4 * hidden_dim, in_dim), jnp.float32) * 0.1
        params[f"w_hh_{l}"] = jax.random.normal(next(k), (4 * hidden_dim, hidden_dim), jnp.float32) * 0.1
        params[f"b_ih_{l}"] = jax.random.normal(next(k), (4 * hidden_dim,), jnp.float32) * 0.1
        params[f"b_hh_{l}"] = jax.random.normal(next(k), (4 * hidden_dim,), jnp.float32) * 0.1
    params["w_fc"] = jax.random.normal(next(k), (O, hidden_dim), jnp.float32) * 0.1
    params["b_fc"] = jax.random.normal(next(k), (O,), jnp.float32) * 0.1
    return params


# -----------------------------------------------------------------------------
# Full DKT forward (matches PyTorch DKT.forward, eval mode, state_in=None).
# -----------------------------------------------------------------------------
@functools.partial(jax.jit, static_argnames=("layer_num", "hidden_dim", "mxu_dtype"))
def dkt_forward(q, qa, params, layer_num, hidden_dim, mxu_dtype=jnp.float32):
    """q, qa: (B, T) int32.  Returns (logits (B,T,O), (h_n, c_n) each (L,B,H))."""
    del q  # the reference forward only consumes `qa` on the compute path
    B, T = qa.shape
    H = hidden_dim
    B_p = _round_up(B, 8)         # sublane tile
    H_p = _round_up(H, 128)       # lane tile (padded gate slots stay exactly 0)
    O = params["w_fc"].shape[0]
    O_p = _round_up(O, 128)       # lane-dense FC output

    # Embedding lookup (plain-JAX glue), then time-major layout + batch pad.
    emb = jnp.take(params["embedding"], qa, axis=0)          # (B, T, E)
    x = jnp.transpose(emb, (1, 0, 2))                        # (T, B, E)
    x = _pad_axis(x, 1, B_p)                                 # (T, B_p, E)

    h0 = jnp.zeros((B_p, H_p), jnp.float32)
    c0 = jnp.zeros((B_p, H_p), jnp.float32)

    layer_in = x                                             # (T, B_p, F_in)
    h_ns, c_ns = [], []
    # TODO(synk): inter-layer dropout (training-mode only) not applied; this
    # reproduces eval-mode semantics.  state_in != None path not implemented.
    for l in range(layer_num):
        w_ih = params[f"w_ih_{l}"]                           # (4H, F_in)
        w_hh = params[f"w_hh_{l}"]                           # (4H, H)
        bias = params[f"b_ih_{l}"] + params[f"b_hh_{l}"]     # (4H,)

        F_in = layer_in.shape[-1]
        wih_t = _pad_gate_axis(jnp.transpose(w_ih), H, H_p)  # (F_in0, 4H_p)
        if l > 0:
            wih_t = _pad_axis(wih_t, 0, H_p)                 # rows for padded h lanes -> 0
        whh_t = _pad_axis(_pad_gate_axis(jnp.transpose(w_hh), H, H_p), 0, H_p)  # (H_p, 4H_p)
        bias_p = _pad_gate_axis(bias, H, H_p).reshape(1, 4 * H_p)

        # (1) Hoisted input projection: one big (T*B_p, F_in) x (F_in, 4H_p) matmul.
        z_in = matmul_bias(layer_in.reshape(T * B_p, F_in), wih_t, bias_p,
                           mxu_dtype=mxu_dtype)
        z_in = z_in.reshape(T, B_p, 4 * H_p)

        # (2) Serial recurrence: only h @ W_hh^T per step, fori_loop inside kernel.
        h_seq, h_n, c_n = lstm_recurrence(z_in, whh_t, h0, c0, mxu_dtype=mxu_dtype)
        h_ns.append(h_n[:B, :H])
        c_ns.append(c_n[:B, :H])
        layer_in = h_seq                                     # (T, B_p, H_p)

    # (3) FC over the flattened sequence, lane-dense padded output.
    wfc_t = _pad_axis(_pad_axis(jnp.transpose(params["w_fc"]), 0, H_p), 1, O_p)  # (H_p, O_p)
    bfc = _pad_axis(params["b_fc"], 0, O_p).reshape(1, O_p)
    logits_flat = matmul_bias(layer_in.reshape(T * B_p, H_p), wfc_t, bfc,
                              mxu_dtype=mxu_dtype)           # (T*B_p, O_p)
    logits = logits_flat.reshape(T, B_p, O_p)[:, :B, :O]
    logits = jnp.transpose(logits, (1, 0, 2))                # (B, T, O)

    state_out = (jnp.stack(h_ns, axis=0), jnp.stack(c_ns, axis=0))  # (L, B, H)
    return logits, state_out


if __name__ == "__main__":
    # Small, self-consistent configuration.
    num_skills = 16
    embed_dim = 32
    input_dim = num_skills * 2        # 32
    hidden_dim = 32
    layer_num = 2
    output_dim = num_skills           # fc out = output_dim + 1 = 17
    B, T = 2, 8

    key = jax.random.PRNGKey(0)
    k_params, k_q, k_qa = jax.random.split(key, 3)
    params = init_params(k_params, embed_dim, input_dim, hidden_dim,
                         layer_num, output_dim)

    q = jax.random.randint(k_q, (B, T), 0, num_skills, jnp.int32)
    qa = jax.random.randint(k_qa, (B, T), 0, input_dim, jnp.int32)

    logits, (h_n, c_n) = dkt_forward(q, qa, params, layer_num, hidden_dim)
    jax.block_until_ready((logits, h_n, c_n))

    assert logits.shape == (B, T, output_dim + 1), logits.shape
    assert h_n.shape == (layer_num, B, hidden_dim), h_n.shape
    assert c_n.shape == (layer_num, B, hidden_dim), c_n.shape
    assert bool(jnp.all(jnp.isfinite(logits))), "non-finite logits"
    print("KERNEL_OK")
</pallas_src>

<mosaic_0001>
module attributes {stable_mosaic.version = 11 : i64} {
  func.func @_matmul_bias_kernel(%arg0: i32, %arg1: memref<64x32xf32, #tpu.memory_space<vmem>>, %arg2: memref<32x512xf32, #tpu.memory_space<vmem>>, %arg3: memref<1x512xf32, #tpu.memory_space<vmem>>, %arg4: memref<64x512xf32, #tpu.memory_space<vmem>>) attributes {dimension_semantics = [#tpu.dimension_semantics<parallel>], iteration_bounds = array<i64: 1>, scalar_prefetch = 0 : i64, scratch_operands = 0 : i64, tpu.core_type = #tpu.core_type<tc>, window_params = [{transform_indices = @transform_0, window_bounds = array<i64: 64, 32>}, {pipeline_mode = #tpu.pipeline_mode<synchronous>, transform_indices = @transform_1, window_bounds = array<i64: 32, 512>}, {pipeline_mode = #tpu.pipeline_mode<synchronous>, transform_indices = @transform_2, window_bounds = array<i64: 1, 512>}, {transform_indices = @transform_3, window_bounds = array<i64: 64, 512>}]} {
    %c0 = arith.constant 0 : index
    %c0_0 = arith.constant 0 : index
    %0 = vector.load %arg1[%c0, %c0_0] : memref<64x32xf32, #tpu.memory_space<vmem>>, vector<64x32xf32>
    %c0_1 = arith.constant 0 : index
    %c0_2 = arith.constant 0 : index
    %1 = vector.load %arg2[%c0_1, %c0_2] : memref<32x512xf32, #tpu.memory_space<vmem>>, vector<32x512xf32>
    %cst = arith.constant dense<0.000000e+00> : vector<64x512xf32>
    %2 = tpu.matmul %0, %1, %cst {dimension_numbers = #tpu.dot_dimension_numbers<[1], [0], [0], [1], [0, 0, 1, 1], [], []>} : vector<64x32xf32>, vector<32x512xf32>, vector<64x512xf32> -> vector<64x512xf32>
    %c0_3 = arith.constant 0 : index
    %c0_4 = arith.constant 0 : index
    %3 = vector.load %arg3[%c0_3, %c0_4] : memref<1x512xf32, #tpu.memory_space<vmem>>, vector<1x512xf32>
    %4 = vector.broadcast %3 : vector<1x512xf32> to vector<64x512xf32>
    %5 = arith.addf %2, %4 : vector<64x512xf32>
    %c0_5 = arith.constant 0 : index
    %c0_6 = arith.constant 0 : index
    %6 = vector.load %arg4[%c0_5, %c0_6] : memref<64x512xf32, #tpu.memory_space<vmem>>, vector<64x512xf32>
    tpu.vector_store %arg4[%c0_5, %c0_6], %5 {strides = array<i32>} : memref<64x512xf32, #tpu.memory_space<vmem>>, vector<64x512xf32>,
    return
  }
  func.func @transform_0(%arg0: i32) -> (i32, i32) {
    %c0_i32 = arith.constant 0 : i32
    %c0_i32_0 = arith.constant 0 : i32
    return %arg0, %c0_i32 : i32, i32
  }
  func.func @transform_1(%arg0: i32) -> (i32, i32) {
    %c0_i32 = arith.constant 0 : i32
    %c0_i32_0 = arith.constant 0 : i32
    %c0_i32_1 = arith.constant 0 : i32
    return %c0_i32, %c0_i32_0 : i32, i32
  }
  func.func @transform_2(%arg0: i32) -> (i32, i32) {
    %c0_i32 = arith.constant 0 : i32
    %c0_i32_0 = arith.constant 0 : i32
    %c0_i32_1 = arith.constant 0 : i32
    return %c0_i32, %c0_i32_0 : i32, i32
  }
  func.func @transform_3(%arg0: i32) -> (i32, i32) {
    %c0_i32 = arith.constant 0 : i32
    %c0_i32_0 = arith.constant 0 : i32
    return %arg0, %c0_i32 : i32, i32
  }
}

module attributes {stable_mosaic.version = 11 : i64} {
  func.func @_matmul_bias_kernel(%arg0: i32, %arg1: memref<64x128xf32, #tpu.memory_space<vmem>>, %arg2: memref<128x512xf32, #tpu.memory_space<vmem>>, %arg3: memref<1x512xf32, #tpu.memory_space<vmem>>, %arg4: memref<64x512xf32, #tpu.memory_space<vmem>>) attributes {dimension_semantics = [#tpu.dimension_semantics<parallel>], iteration_bounds = array<i64: 1>, scalar_prefetch = 0 : i64, scratch_operands = 0 : i64, tpu.core_type = #tpu.core_type<tc>, window_params = [{transform_indices = @transform_0, window_bounds = array<i64: 64, 128>}, {pipeline_mode = #tpu.pipeline_mode<synchronous>, transform_indices = @transform_1, window_bounds = array<i64: 128, 512>}, {pipeline_mode = #tpu.pipeline_mode<synchronous>, transform_indices = @transform_2, window_bounds = array<i64: 1, 512>}, {transform_indices = @transform_3, window_bounds = array<i64: 64, 512>}]} {
    %c0 = arith.constant 0 : index
    %c0_0 = arith.constant 0 : index
    %0 = vector.load %arg1[%c0, %c0_0] : memref<64x128xf32, #tpu.memory_space<vmem>>, vector<64x128xf32>
    %c0_1 = arith.constant 0 : index
    %c0_2 = arith.constant 0 : index
    %1 = vector.load %arg2[%c0_1, %c0_2] : memref<128x512xf32, #tpu.memory_space<vmem>>, vector<128x512xf32>
    %cst = arith.constant dense<0.000000e+00> : vector<64x512xf32>
    %2 = tpu.matmul %0, %1, %cst {dimension_numbers = #tpu.dot_dimension_numbers<[1], [0], [0], [1], [0, 0, 1, 1], [], []>} : vector<64x128xf32>, vector<128x512xf32>, vector<64x512xf32> -> vector<64x512xf32>
    %c0_3 = arith.constant 0 : index
    %c0_4 = arith.constant 0 : index
    %3 = vector.load %arg3[%c0_3, %c0_4] : memref<1x512xf32, #tpu.memory_space<vmem>>, vector<1x512xf32>
    %4 = vector.broadcast %3 : vector<1x512xf32> to vector<64x512xf32>
    %5 = arith.addf %2, %4 : vector<64x512xf32>
    %c0_5 = arith.constant 0 : index
    %c0_6 = arith.constant 0 : index
    %6 = vector.load %arg4[%c0_5, %c0_6] : memref<64x512xf32, #tpu.memory_space<vmem>>, vector<64x512xf32>
    tpu.vector_store %arg4[%c0_5, %c0_6], %5 {strides = array<i32>} : memref<64x512xf32, #tpu.memory_space<vmem>>, vector<64x512xf32>,
    return
  }
  func.func @transform_0(%arg0: i32) -> (i32, i32) {
    %c0_i32 = arith.constant 0 : i32
    %c0_i32_0 = arith.constant 0 : i32
    return %arg0, %c0_i32 : i32, i32
  }
  func.func @transform_1(%arg0: i32) -> (i32, i32) {
    %c0_i32 = arith.constant 0 : i32
    %c0_i32_0 = arith.constant 0 : i32
    %c0_i32_1 = arith.constant 0 : i32
    return %c0_i32, %c0_i32_0 : i32, i32
  }
  func.func @transform_2(%arg0: i32) -> (i32, i32) {
    %c0_i32 = arith.constant 0 : i32
    %c0_i32_0 = arith.constant 0 : i32
    %c0_i32_1 = arith.constant 0 : i32
    return %c0_i32, %c0_i32_0 : i32, i32
  }
  func.func @transform_3(%arg0: i32) -> (i32, i32) {
    %c0_i32 = arith.constant 0 : i32
    %c0_i32_0 = arith.constant 0 : i32
    return %arg0, %c0_i32 : i32, i32
  }
}

module attributes {stable_mosaic.version = 11 : i64} {
  func.func @_lstm_rec_kernel(%arg0: i32, %arg1: memref<8x8x512xf32, #tpu.memory_space<vmem>>, %arg2: memref<128x512xf32, #tpu.memory_space<vmem>>, %arg3: memref<8x128xf32, #tpu.memory_space<vmem>>, %arg4: memref<8x128xf32, #tpu.memory_space<vmem>>, %arg5: memref<8x8x128xf32, #tpu.memory_space<vmem>>, %arg6: memref<8x128xf32, #tpu.memory_space<vmem>>, %arg7: memref<8x128xf32, #tpu.memory_space<vmem>>, %arg8: memref<8x128xf32, #tpu.memory_space<vmem>>, %arg9: memref<8x128xf32, #tpu.memory_space<vmem>>) attributes {dimension_semantics = [#tpu.dimension_semantics<arbitrary>], iteration_bounds = array<i64: 1>, scalar_prefetch = 0 : i64, scratch_operands = 2 : i64, tpu.core_type = #tpu.core_type<tc>, window_params = [{transform_indices = @transform_0, window_bounds = array<i64: 8, 8, 512>}, {pipeline_mode = #tpu.pipeline_mode<synchronous>, transform_indices = @transform_1, window_bounds = array<i64: 128, 512>}, {pipeline_mode = #tpu.pipeline_mode<synchronous>, transform_indices = @transform_2, window_bounds = array<i64: 8, 128>}, {pipeline_mode = #tpu.pipeline_mode<synchronous>, transform_indices = @transform_3, window_bounds = array<i64: 8, 128>}, {transform_indices = @transform_4, window_bounds = array<i64: 8, 8, 128>}, {pipeline_mode = #tpu.pipeline_mode<synchronous>, transform_indices = @transform_5, window_bounds = array<i64: 8, 128>}, {pipeline_mode = #tpu.pipeline_mode<synchronous>, transform_indices = @transform_6, window_bounds = array<i64: 8, 128>}]} {
    %c0_i32 = arith.constant 0 : i32
    %0 = arith.cmpi eq, %arg0, %c0_i32 : i32
    %1 = arith.extui %0 : i1 to i32
    %c0_i32_0 = arith.constant 0 : i32
    %2 = arith.cmpi ne, %1, %c0_i32_0 : i32
    scf.if %2 {
      %c0_92 = arith.constant 0 : index
      %c0_93 = arith.constant 0 : index
      %289 = vector.load %arg3[%c0_92, %c0_93] : memref<8x128xf32, #tpu.memory_space<vmem>>, vector<8x128xf32>
      %c0_94 = arith.constant 0 : index
      %c0_95 = arith.constant 0 : index
      %290 = vector.load %arg8[%c0_94, %c0_95] : memref<8x128xf32, #tpu.memory_space<vmem>>, vector<8x128xf32>
      tpu.vector_store %arg8[%c0_94, %c0_95], %289 {strides = array<i32>} : memref<8x128xf32, #tpu.memory_space<vmem>>, vector<8x128xf32>,
      %c0_96 = arith.constant 0 : index
      %c0_97 = arith.constant 0 : index
      %291 = vector.load %arg4[%c0_96, %c0_97] : memref<8x128xf32, #tpu.memory_space<vmem>>, vector<8x128xf32>
      %c0_98 = arith.constant 0 : index
      %c0_99 = arith.constant 0 : index
      %292 = vector.load %arg9[%c0_98, %c0_99] : memref<8x128xf32, #tpu.memory_space<vmem>>, vector<8x128xf32>
      tpu.vector_store %arg9[%c0_98, %c0_99], %291 {strides = array<i32>} : memref<8x128xf32, #tpu.memory_space<vmem>>, vector<8x128xf32>,
    } else {
    }
    %c0 = arith.constant 0 : index
    %c0_1 = arith.constant 0 : index
    %3 = vector.load %arg8[%c0, %c0_1] : memref<8x128xf32, #tpu.memory_space<vmem>>, vector<8x128xf32>
    %c0_2 = arith.constant 0 : index
    %c0_3 = arith.constant 0 : index
    %4 = vector.load %arg9[%c0_2, %c0_3] : memref<8x128xf32, #tpu.memory_space<vmem>>, vector<8x128xf32>
    %c0_i32_4 = arith.constant 0 : i32
    %5 = arith.index_cast %c0_i32_4 : i32 to index
    %c0_5 = arith.constant 0 : index
    %c0_6 = arith.constant 0 : index
    %6 = vector.load %arg1[%5, %c0_5, %c0_6] : memref<8x8x512xf32, #tpu.memory_space<vmem>>, vector<1x8x512xf32>
    %7 = vector.shape_cast %6 : vector<1x8x512xf32> to vector<8x512xf32>
    %c0_7 = arith.constant 0 : index
    %c0_8 = arith.constant 0 : index
    %8 = vector.load %arg2[%c0_7, %c0_8] : memref<128x512xf32, #tpu.memory_space<vmem>>, vector<128x512xf32>
    %cst = arith.constant dense<0.000000e+00> : vector<8x512xf32>
    %9 = tpu.matmul %3, %8, %cst {dimension_numbers = #tpu.dot_dimension_numbers<[1], [0], [0], [1], [0, 0, 1, 1], [], []>} : vector<8x128xf32>, vector<128x512xf32>, vector<8x512xf32> -> vector<8x512xf32>
    %10 = arith.addf %7, %9 : vector<8x512xf32>
    %11 = vector.extract_strided_slice %10 {offsets = [0, 0], sizes = [8, 128], strides = [1, 1]} : vector<8x512xf32> to vector<8x128xf32>
    %12 = arith.negf %11 : vector<8x128xf32>
    %13 = math.exp %12 : vector<8x128xf32>
    %cst_9 = arith.constant 1.000000e+00 : f32
    %14 = vector.broadcast %cst_9 : f32 to vector<8x128xf32>
    %15 = arith.addf %14, %13 : vector<8x128xf32>
    %16 = arith.divf %14, %15 : vector<8x128xf32>
    %17 = vector.extract_strided_slice %10 {offsets = [0, 128], sizes = [8, 128], strides = [1, 1]} : vector<8x512xf32> to vector<8x128xf32>
    %18 = arith.negf %17 : vector<8x128xf32>
    %19 = math.exp %18 : vector<8x128xf32>
    %cst_10 = arith.constant 1.000000e+00 : f32
    %20 = vector.broadcast %cst_10 : f32 to vector<8x128xf32>
    %21 = arith.addf %20, %19 : vector<8x128xf32>
    %22 = arith.divf %20, %21 : vector<8x128xf32>
    %23 = vector.extract_strided_slice %10 {offsets = [0, 256], sizes = [8, 128], strides = [1, 1]} : vector<8x512xf32> to vector<8x128xf32>
    %24 = math.tanh %23 : vector<8x128xf32>
    %25 = vector.extract_strided_slice %10 {offsets = [0, 384], sizes = [8, 128], strides = [1, 1]} : vector<8x512xf32> to vector<8x128xf32>
    %26 = arith.negf %25 : vector<8x128xf32>
    %27 = math.exp %26 : vector<8x128xf32>
    %cst_11 = arith.constant 1.000000e+00 : f32
    %28 = vector.broadcast %cst_11 : f32 to vector<8x128xf32>
    %29 = arith.addf %28, %27 : vector<8x128xf32>
    %30 = arith.divf %28, %29 : vector<8x128xf32>
    %31 = arith.mulf %22, %4 : vector<8x128xf32>
    %32 = arith.mulf %16, %24 : vector<8x128xf32>
    %33 = arith.addf %31, %32 : vector<8x128xf32>
    %34 = math.tanh %33 : vector<8x128xf32>
    %35 = arith.mulf %30, %34 : vector<8x128xf32>
    %36 = arith.index_cast %c0_i32_4 : i32 to index
    %c0_12 = arith.constant 0 : index
    %c0_13 = arith.constant 0 : index
    %37 = vector.load %arg5[%36, %c0_12, %c0_13] : memref<8x8x128xf32, #tpu.memory_space<vmem>>, vector<1x8x128xf32>
    %38 = vector.shape_cast %37 : vector<1x8x128xf32> to vector<8x128xf32>
    %39 = vector.shape_cast %35 : vector<8x128xf32> to vector<1x8x128xf32>
    tpu.vector_store %arg5[%36, %c0_12, %c0_13], %39 {strides = array<i32>} : memref<8x8x128xf32, #tpu.memory_space<vmem>>, vector<1x8x128xf32>,
    %c1_i32 = arith.constant 1 : i32
    %40 = arith.index_cast %c1_i32 : i32 to index
    %c0_14 = arith.constant 0 : index
    %c0_15 = arith.constant 0 : index
    %41 = vector.load %arg1[%40, %c0_14, %c0_15] : memref<8x8x512xf32, #tpu.memory_space<vmem>>, vector<1x8x512xf32>
    %42 = vector.shape_cast %41 : vector<1x8x512xf32> to vector<8x512xf32>
    %c0_16 = arith.constant 0 : index
    %c0_17 = arith.constant 0 : index
    %43 = vector.load %arg2[%c0_16, %c0_17] : memref<128x512xf32, #tpu.memory_space<vmem>>, vector<128x512xf32>
    %cst_18 = arith.constant dense<0.000000e+00> : vector<8x512xf32>
    %44 = tpu.matmul %35, %43, %cst_18 {dimension_numbers = #tpu.dot_dimension_numbers<[1], [0], [0], [1], [0, 0, 1, 1], [], []>} : vector<8x128xf32>, vector<128x512xf32>, vector<8x512xf32> -> vector<8x512xf32>
    %45 = arith.addf %42, %44 : vector<8x512xf32>
    %46 = vector.extract_strided_slice %45 {offsets = [0, 0], sizes = [8, 128], strides = [1, 1]} : vector<8x512xf32> to vector<8x128xf32>
    %47 = arith.negf %46 : vector<8x128xf32>
    %48 = math.exp %47 : vector<8x128xf32>
    %cst_19 = arith.constant 1.000000e+00 : f32
    %49 = vector.broadcast %cst_19 : f32 to vector<8x128xf32>
    %50 = arith.addf %49, %48 : vector<8x128xf32>
    %51 = arith.divf %49, %50 : vector<8x128xf32>
    %52 = vector.extract_strided_slice %45 {offsets = [0, 128], sizes = [8, 128], strides = [1, 1]} : vector<8x512xf32> to vector<8x128xf32>
    %53 = arith.negf %52 : vector<8x128xf32>
    %54 = math.exp %53 : vector<8x128xf32>
    %cst_20 = arith.constant 1.000000e+00 : f32
    %55 = vector.broadcast %cst_20 : f32 to vector<8x128xf32>
    %56 = arith.addf %55, %54 : vector<8x128xf32>
    %57 = arith.divf %55, %56 : vector<8x128xf32>
    %58 = vector.extract_strided_slice %45 {offsets = [0, 256], sizes = [8, 128], strides = [1, 1]} : vector<8x512xf32> to vector<8x128xf32>
    %59 = math.tanh %58 : vector<8x128xf32>
    %60 = vector.extract_strided_slice %45 {offsets = [0, 384], sizes = [8, 128], strides = [1, 1]} : vector<8x512xf32> to vector<8x128xf32>
    %61 = arith.negf %60 : vector<8x128xf32>
    %62 = math.exp %61 : vector<8x128xf32>
    %cst_21 = arith.constant 1.000000e+00 : f32
    %63 = vector.broadcast %cst_21 : f32 to vector<8x128xf32>
    %64 = arith.addf %63, %62 : vector<8x128xf32>
    %65 = arith.divf %63, %64 : vector<8x128xf32>
    %66 = arith.mulf %57, %33 : vector<8x128xf32>
    %67 = arith.mulf %51, %59 : vector<8x128xf32>
    %68 = arith.addf %66, %67 : vector<8x128xf32>
    %69 = math.tanh %68 : vector<8x128xf32>
    %70 = arith.mulf %65, %69 : vector<8x128xf32>
    %71 = arith.index_cast %c1_i32 : i32 to index
    %c0_22 = arith.constant 0 : index
    %c0_23 = arith.constant 0 : index
    %72 = vector.load %arg5[%71, %c0_22, %c0_23] : memref<8x8x128xf32, #tpu.memory_space<vmem>>, vector<1x8x128xf32>
    %73 = vector.shape_cast %72 : vector<1x8x128xf32> to vector<8x128xf32>
    %74 = vector.shape_cast %70 : vector<8x128xf32> to vector<1x8x128xf32>
    tpu.vector_store %arg5[%71, %c0_22, %c0_23], %74 {strides = array<i32>} : memref<8x8x128xf32, #tpu.memory_space<vmem>>, vector<1x8x128xf32>,
    %c2_i32 = arith.constant 2 : i32
    %75 = arith.index_cast %c2_i32 : i32 to index
    %c0_24 = arith.constant 0 : index
    %c0_25 = arith.constant 0 : index
    %76 = vector.load %arg1[%75, %c0_24, %c0_25] : memref<8x8x512xf32, #tpu.memory_space<vmem>>, vector<1x8x512xf32>
    %77 = vector.shape_cast %76 : vector<1x8x512xf32> to vector<8x512xf32>
    %c0_26 = arith.constant 0 : index
    %c0_27 = arith.constant 0 : index
    %78 = vector.load %arg2[%c0_26, %c0_27] : memref<128x512xf32, #tpu.memory_space<vmem>>, vector<128x512xf32>
    %cst_28 = arith.constant dense<0.000000e+00> : vector<8x512xf32>
    %79 = tpu.matmul %70, %78, %cst_28 {dimension_numbers = #tpu.dot_dimension_numbers<[1], [0], [0], [1], [0, 0, 1, 1], [], []>} : vector<8x128xf32>, vector<128x512xf32>, vector<8x512xf32> -> vector<8x512xf32>
    %80 = arith.addf %77, %79 : vector<8x512xf32>
    %81 = vector.extract_strided_slice %80 {offsets = [0, 0], sizes = [8, 128], strides = [1, 1]} : vector<8x512xf32> to vector<8x128xf32>
    %82 = arith.negf %81 : vector<8x128xf32>
    %83 = math.exp %82 : vector<8x128xf32>
    %cst_29 = arith.constant 1.000000e+00 : f32
    %84 = vector.broadcast %cst_29 : f32 to vector<8x128xf32>
    %85 = arith.addf %84, %83 : vector<8x128xf32>
    %86 = arith.divf %84, %85 : vector<8x128xf32>
    %87 = vector.extract_strided_slice %80 {offsets = [0, 128], sizes = [8, 128], strides = [1, 1]} : vector<8x512xf32> to vector<8x128xf32>
    %88 = arith.negf %87 : vector<8x128xf32>
    %89 = math.exp %88 : vector<8x128xf32>
    %cst_30 = arith.constant 1.000000e+00 : f32
    %90 = vector.broadcast %cst_30 : f32 to vector<8x128xf32>
    %91 = arith.addf %90, %89 : vector<8x128xf32>
    %92 = arith.divf %90, %91 : vector<8x128xf32>
    %93 = vector.extract_strided_slice %80 {offsets = [0, 256], sizes = [8, 128], strides = [1, 1]} : vector<8x512xf32> to vector<8x128xf32>
    %94 = math.tanh %93 : vector<8x128xf32>
    %95 = vector.extract_strided_slice %80 {offsets = [0, 384], sizes = [8, 128], strides = [1, 1]} : vector<8x512xf32> to vector<8x128xf32>
    %96 = arith.negf %95 : vector<8x128xf32>
    %97 = math.exp %96 : vector<8x128xf32>
    %cst_31 = arith.constant 1.000000e+00 : f32
    %98 = vector.broadcast %cst_31 : f32 to vector<8x128xf32>
    %99 = arith.addf %98, %97 : vector<8x128xf32>
    %100 = arith.divf %98, %99 : vector<8x128xf32>
    %101 = arith.mulf %92, %68 : vector<8x128xf32>
    %102 = arith.mulf %86, %94 : vector<8x128xf32>
    %103 = arith.addf %101, %102 : vector<8x128xf32>
    %104 = math.tanh %103 : vector<8x128xf32>
    %105 = arith.mulf %100, %104 : vector<8x128xf32>
    %106 = arith.index_cast %c2_i32 : i32 to index
    %c0_32 = arith.constant 0 : index
    %c0_33 = arith.constant 0 : index
    %107 = vector.load %arg5[%106, %c0_32, %c0_33] : memref<8x8x128xf32, #tpu.memory_space<vmem>>, vector<1x8x128xf32>
    %108 = vector.shape_cast %107 : vector<1x8x128xf32> to vector<8x128xf32>
    %109 = vector.shape_cast %105 : vector<8x128xf32> to vector<1x8x128xf32>
    tpu.vector_store %arg5[%106, %c0_32, %c0_33], %109 {strides = array<i32>} : memref<8x8x128xf32, #tpu.memory_space<vmem>>, vector<1x8x128xf32>,
    %c3_i32 = arith.constant 3 : i32
    %110 = arith.index_cast %c3_i32 : i32 to index
    %c0_34 = arith.constant 0 : index
    %c0_35 = arith.constant 0 : index
    %111 = vector.load %arg1[%110, %c0_34, %c0_35] : memref<8x8x512xf32, #tpu.memory_space<vmem>>, vector<1x8x512xf32>
    %112 = vector.shape_cast %111 : vector<1x8x512xf32> to vector<8x512xf32>
    %c0_36 = arith.constant 0 : index
    %c0_37 = arith.constant 0 : index
    %113 = vector.load %arg2[%c0_36, %c0_37] : memref<128x512xf32, #tpu.memory_space<vmem>>, vector<128x512xf32>
    %cst_38 = arith.constant dense<0.000000e+00> : vector<8x512xf32>
    %114 = tpu.matmul %105, %113, %cst_38 {dimension_numbers = #tpu.dot_dimension_numbers<[1], [0], [0], [1], [0, 0, 1, 1], [], []>} : vector<8x128xf32>, vector<128x512xf32>, vector<8x512xf32> -> vector<8x512xf32>
    %115 = arith.addf %112, %114 : vector<8x512xf32>
    %116 = vector.extract_strided_slice %115 {offsets = [0, 0], sizes = [8, 128], strides = [1, 1]} : vector<8x512xf32> to vector<8x128xf32>
    %117 = arith.negf %116 : vector<8x128xf32>
    %118 = math.exp %117 : vector<8x128xf32>
    %cst_39 = arith.constant 1.000000e+00 : f32
    %119 = vector.broadcast %cst_39 : f32 to vector<8x128xf32>
    %120 = arith.addf %119, %118 : vector<8x128xf32>
    %121 = arith.divf %119, %120 : vector<8x128xf32>
    %122 = vector.extract_strided_slice %115 {offsets = [0, 128], sizes = [8, 128], strides = [1, 1]} : vector<8x512xf32> to vector<8x128xf32>
    %123 = arith.negf %122 : vector<8x128xf32>
    %124 = math.exp %123 : vector<8x128xf32>
    %cst_40 = arith.constant 1.000000e+00 : f32
    %125 = vector.broadcast %cst_40 : f32 to vector<8x128xf32>
    %126 = arith.addf %125, %124 : vector<8x128xf32>
    %127 = arith.divf %125, %126 : vector<8x128xf32>
    %128 = vector.extract_strided_slice %115 {offsets = [0, 256], sizes = [8, 128], strides = [1, 1]} : vector<8x512xf32> to vector<8x128xf32>
    %129 = math.tanh %128 : vector<8x128xf32>
    %130 = vector.extract_strided_slice %115 {offsets = [0, 384], sizes = [8, 128], strides = [1, 1]} : vector<8x512xf32> to vector<8x128xf32>
    %131 = arith.negf %130 : vector<8x128xf32>
    %132 = math.exp %131 : vector<8x128xf32>
    %cst_41 = arith.constant 1.000000e+00 : f32
    %133 = vector.broadcast %cst_41 : f32 to vector<8x128xf32>
    %134 = arith.addf %133, %132 : vector<8x128xf32>
    %135 = arith.divf %133, %134 : vector<8x128xf32>
    %136 = arith.mulf %127, %103 : vector<8x128xf32>
    %137 = arith.mulf %121, %129 : vector<8x128xf32>
    %138 = arith.addf %136, %137 : vector<8x128xf32>
    %139 = math.tanh %138 : vector<8x128xf32>
    %140 = arith.mulf %135, %139 : vector<8x128xf32>
    %141 = arith.index_cast %c3_i32 : i32 to index
    %c0_42 = arith.constant 0 : index
    %c0_43 = arith.constant 0 : index
    %142 = vector.load %arg5[%141, %c0_42, %c0_43] : memref<8x8x128xf32, #tpu.memory_space<vmem>>, vector<1x8x128xf32>
    %143 = vector.shape_cast %142 : vector<1x8x128xf32> to vector<8x128xf32>
    %144 = vector.shape_cast %140 : vector<8x128xf32> to vector<1x8x128xf32>
    tpu.vector_store %arg5[%141, %c0_42, %c0_43], %144 {strides = array<i32>} : memref<8x8x128xf32, #tpu.memory_space<vmem>>, vector<1x8x128xf32>,
    %c4_i32 = arith.constant 4 : i32
    %145 = arith.index_cast %c4_i32 : i32 to index
    %c0_44 = arith.constant 0 : index
    %c0_45 = arith.constant 0 : index
    %146 = vector.load %arg1[%145, %c0_44, %c0_45] : memref<8x8x512xf32, #tpu.memory_space<vmem>>, vector<1x8x512xf32>
    %147 = vector.shape_cast %146 : vector<1x8x512xf32> to vector<8x512xf32>
    %c0_46 = arith.constant 0 : index
    %c0_47 = arith.constant 0 : index
    %148 = vector.load %arg2[%c0_46, %c0_47] : memref<128x512xf32, #tpu.memory_space<vmem>>, vector<128x512xf32>
    %cst_48 = arith.constant dense<0.000000e+00> : vector<8x512xf32>
    %149 = tpu.matmul %140, %148, %cst_48 {dimension_numbers = #tpu.dot_dimension_numbers<[1], [0], [0], [1], [0, 0, 1, 1], [], []>} : vector<8x128xf32>, vector<128x512xf32>, vector<8x512xf32> -> vector<8x512xf32>
    %150 = arith.addf %147, %149 : vector<8x512xf32>
    %151 = vector.extract_strided_slice %150 {offsets = [0, 0], sizes = [8, 128], strides = [1, 1]} : vector<8x512xf32> to vector<8x128xf32>
    %152 = arith.negf %151 : vector<8x128xf32>
    %153 = math.exp %152 : vector<8x128xf32>
    %cst_49 = arith.constant 1.000000e+00 : f32
    %154 = vector.broadcast %cst_49 : f32 to vector<8x128xf32>
    %155 = arith.addf %154, %153 : vector<8x128xf32>
    %156 = arith.divf %154, %155 : vector<8x128xf32>
    %157 = vector.extract_strided_slice %150 {offsets = [0, 128], sizes = [8, 128], strides = [1, 1]} : vector<8x512xf32> to vector<8x128xf32>
    %158 = arith.negf %157 : vector<8x128xf32>
    %159 = math.exp %158 : vector<8x128xf32>
    %cst_50 = arith.constant 1.000000e+00 : f32
    %160 = vector.broadcast %cst_50 : f32 to vector<8x128xf32>
    %161 = arith.addf %160, %159 : vector<8x128xf32>
    %162 = arith.divf %160, %161 : vector<8x128xf32>
    %163 = vector.extract_strided_slice %150 {offsets = [0, 256], sizes = [8, 128], strides = [1, 1]} : vector<8x512xf32> to vector<8x128xf32>
    %164 = math.tanh %163 : vector<8x128xf32>
    %165 = vector.extract_strided_slice %150 {offsets = [0, 384], sizes = [8, 128], strides = [1, 1]} : vector<8x512xf32> to vector<8x128xf32>
    %166 = arith.negf %165 : vector<8x128xf32>
    %167 = math.exp %166 : vector<8x128xf32>
    %cst_51 = arith.constant 1.000000e+00 : f32
    %168 = vector.broadcast %cst_51 : f32 to vector<8x128xf32>
    %169 = arith.addf %168, %167 : vector<8x128xf32>
    %170 = arith.divf %168, %169 : vector<8x128xf32>
    %171 = arith.mulf %162, %138 : vector<8x128xf32>
    %172 = arith.mulf %156, %164 : vector<8x128xf32>
    %173 = arith.addf %171, %172 : vector<8x128xf32>
    %174 = math.tanh %173 : vector<8x128xf32>
    %175 = arith.mulf %170, %174 : vector<8x128xf32>
    %176 = arith.index_cast %c4_i32 : i32 to index
    %c0_52 = arith.constant 0 : index
    %c0_53 = arith.constant 0 : index
    %177 = vector.load %arg5[%176, %c0_52, %c0_53] : memref<8x8x128xf32, #tpu.memory_space<vmem>>, vector<1x8x128xf32>
    %178 = vector.shape_cast %177 : vector<1x8x128xf32> to vector<8x128xf32>
    %179 = vector.shape_cast %175 : vector<8x128xf32> to vector<1x8x128xf32>
    tpu.vector_store %arg5[%176, %c0_52, %c0_53], %179 {strides = array<i32>} : memref<8x8x128xf32, #tpu.memory_space<vmem>>, vector<1x8x128xf32>,
    %c5_i32 = arith.constant 5 : i32
    %180 = arith.index_cast %c5_i32 : i32 to index
    %c0_54 = arith.constant 0 : index
    %c0_55 = arith.constant 0 : index
    %181 = vector.load %arg1[%180, %c0_54, %c0_55] : memref<8x8x512xf32, #tpu.memory_space<vmem>>, vector<1x8x512xf32>
    %182 = vector.shape_cast %181 : vector<1x8x512xf32> to vector<8x512xf32>
    %c0_56 = arith.constant 0 : index
    %c0_57 = arith.constant 0 : index
    %183 = vector.load %arg2[%c0_56, %c0_57] : memref<128x512xf32, #tpu.memory_space<vmem>>, vector<128x512xf32>
    %cst_58 = arith.constant dense<0.000000e+00> : vector<8x512xf32>
    %184 = tpu.matmul %175, %183, %cst_58 {dimension_numbers = #tpu.dot_dimension_numbers<[1], [0], [0], [1], [0, 0, 1, 1], [], []>} : vector<8x128xf32>, vector<128x512xf32>, vector<8x512xf32> -> vector<8x512xf32>
    %185 = arith.addf %182, %184 : vector<8x512xf32>
    %186 = vector.extract_strided_slice %185 {offsets = [0, 0], sizes = [8, 128], strides = [1, 1]} : vector<8x512xf32> to vector<8x128xf32>
    %187 = arith.negf %186 : vector<8x128xf32>
    %188 = math.exp %187 : vector<8x128xf32>
    %cst_59 = arith.constant 1.000000e+00 : f32
    %189 = vector.broadcast %cst_59 : f32 to vector<8x128xf32>
    %190 = arith.addf %189, %188 : vector<8x128xf32>
    %191 = arith.divf %189, %190 : vector<8x128xf32>
    %192 = vector.extract_strided_slice %185 {offsets = [0, 128], sizes = [8, 128], strides = [1, 1]} : vector<8x512xf32> to vector<8x128xf32>
    %193 = arith.negf %192 : vector<8x128xf32>
    %194 = math.exp %193 : vector<8x128xf32>
    %cst_60 = arith.constant 1.000000e+00 : f32
    %195 = vector.broadcast %cst_60 : f32 to vector<8x128xf32>
    %196 = arith.addf %195, %194 : vector<8x128xf32>
    %197 = arith.divf %195, %196 : vector<8x128xf32>
    %198 = vector.extract_strided_slice %185 {offsets = [0, 256], sizes = [8, 128], strides = [1, 1]} : vector<8x512xf32> to vector<8x128xf32>
    %199 = math.tanh %198 : vector<8x128xf32>
    %200 = vector.extract_strided_slice %185 {offsets = [0, 384], sizes = [8, 128], strides = [1, 1]} : vector<8x512xf32> to vector<8x128xf32>
    %201 = arith.negf %200 : vector<8x128xf32>
    %202 = math.exp %201 : vector<8x128xf32>
    %cst_61 = arith.constant 1.000000e+00 : f32
    %203 = vector.broadcast %cst_61 : f32 to vector<8x128xf32>
    %204 = arith.addf %203, %202 : vector<8x128xf32>
    %205 = arith.divf %203, %204 : vector<8x128xf32>
    %206 = arith.mulf %197, %173 : vector<8x128xf32>
    %207 = arith.mulf %191, %199 : vector<8x128xf32>
    %208 = arith.addf %206, %207 : vector<8x128xf32>
    %209 = math.tanh %208 : vector<8x128xf32>
    %210 = arith.mulf %205, %209 : vector<8x128xf32>
    %211 = arith.index_cast %c5_i32 : i32 to index
    %c0_62 = arith.constant 0 : index
    %c0_63 = arith.constant 0 : index
    %212 = vector.load %arg5[%211, %c0_62, %c0_63] : memref<8x8x128xf32, #tpu.memory_space<vmem>>, vector<1x8x128xf32>
    %213 = vector.shape_cast %212 : vector<1x8x128xf32> to vector<8x128xf32>
    %214 = vector.shape_cast %210 : vector<8x128xf32> to vector<1x8x128xf32>
    tpu.vector_store %arg5[%211, %c0_62, %c0_63], %214 {strides = array<i32>} : memref<8x8x128xf32, #tpu.memory_space<vmem>>, vector<1x8x128xf32>,
    %c6_i32 = arith.constant 6 : i32
    %215 = arith.index_cast %c6_i32 : i32 to index
    %c0_64 = arith.constant 0 : index
    %c0_65 = arith.constant 0 : index
    %216 = vector.load %arg1[%215, %c0_64, %c0_65] : memref<8x8x512xf32, #tpu.memory_space<vmem>>, vector<1x8x512xf32>
    %217 = vector.shape_cast %216 : vector<1x8x512xf32> to vector<8x512xf32>
    %c0_66 = arith.constant 0 : index
    %c0_67 = arith.constant 0 : index
    %218 = vector.load %arg2[%c0_66, %c0_67] : memref<128x512xf32, #tpu.memory_space<vmem>>, vector<128x512xf32>
    %cst_68 = arith.constant dense<0.000000e+00> : vector<8x512xf32>
    %219 = tpu.matmul %210, %218, %cst_68 {dimension_numbers = #tpu.dot_dimension_numbers<[1], [0], [0], [1], [0, 0, 1, 1], [], []>} : vector<8x128xf32>, vector<128x512xf32>, vector<8x512xf32> -> vector<8x512xf32>
    %220 = arith.addf %217, %219 : vector<8x512xf32>
    %221 = vector.extract_strided_slice %220 {offsets = [0, 0], sizes = [8, 128], strides = [1, 1]} : vector<8x512xf32> to vector<8x128xf32>
    %222 = arith.negf %221 : vector<8x128xf32>
    %223 = math.exp %222 : vector<8x128xf32>
    %cst_69 = arith.constant 1.000000e+00 : f32
    %224 = vector.broadcast %cst_69 : f32 to vector<8x128xf32>
    %225 = arith.addf %224, %223 : vector<8x128xf32>
    %226 = arith.divf %224, %225 : vector<8x128xf32>
    %227 = vector.extract_strided_slice %220 {offsets = [0, 128], sizes = [8, 128], strides = [1, 1]} : vector<8x512xf32> to vector<8x128xf32>
    %228 = arith.negf %227 : vector<8x128xf32>
    %229 = math.exp %228 : vector<8x128xf32>
    %cst_70 = arith.constant 1.000000e+00 : f32
    %230 = vector.broadcast %cst_70 : f32 to vector<8x128xf32>
    %231 = arith.addf %230, %229 : vector<8x128xf32>
    %232 = arith.divf %230, %231 : vector<8x128xf32>
    %233 = vector.extract_strided_slice %220 {offsets = [0, 256], sizes = [8, 128], strides = [1, 1]} : vector<8x512xf32> to vector<8x128xf32>
    %234 = math.tanh %233 : vector<8x128xf32>
    %235 = vector.extract_strided_slice %220 {offsets = [0, 384], sizes = [8, 128], strides = [1, 1]} : vector<8x512xf32> to vector<8x128xf32>
    %236 = arith.negf %235 : vector<8x128xf32>
    %237 = math.exp %236 : vector<8x128xf32>
    %cst_71 = arith.constant 1.000000e+00 : f32
    %238 = vector.broadcast %cst_71 : f32 to vector<8x128xf32>
    %239 = arith.addf %238, %237 : vector<8x128xf32>
    %240 = arith.divf %238, %239 : vector<8x128xf32>
    %241 = arith.mulf %232, %208 : vector<8x128xf32>
    %242 = arith.mulf %226, %234 : vector<8x128xf32>
    %243 = arith.addf %241, %242 : vector<8x128xf32>
    %244 = math.tanh %243 : vector<8x128xf32>
    %245 = arith.mulf %240, %244 : vector<8x128xf32>
    %246 = arith.index_cast %c6_i32 : i32 to index
    %c0_72 = arith.constant 0 : index
    %c0_73 = arith.constant 0 : index
    %247 = vector.load %arg5[%246, %c0_72, %c0_73] : memref<8x8x128xf32, #tpu.memory_space<vmem>>, vector<1x8x128xf32>
    %248 = vector.shape_cast %247 : vector<1x8x128xf32> to vector<8x128xf32>
    %249 = vector.shape_cast %245 : vector<8x128xf32> to vector<1x8x128xf32>
    tpu.vector_store %arg5[%246, %c0_72, %c0_73], %249 {strides = array<i32>} : memref<8x8x128xf32, #tpu.memory_space<vmem>>, vector<1x8x128xf32>,
    %c7_i32 = arith.constant 7 : i32
    %250 = arith.index_cast %c7_i32 : i32 to index
    %c0_74 = arith.constant 0 : index
    %c0_75 = arith.constant 0 : index
    %251 = vector.load %arg1[%250, %c0_74, %c0_75] : memref<8x8x512xf32, #tpu.memory_space<vmem>>, vector<1x8x512xf32>
    %252 = vector.shape_cast %251 : vector<1x8x512xf32> to vector<8x512xf32>
    %c0_76 = arith.constant 0 : index
    %c0_77 = arith.constant 0 : index
    %253 = vector.load %arg2[%c0_76, %c0_77] : memref<128x512xf32, #tpu.memory_space<vmem>>, vector<128x512xf32>
    %cst_78 = arith.constant dense<0.000000e+00> : vector<8x512xf32>
    %254 = tpu.matmul %245, %253, %cst_78 {dimension_numbers = #tpu.dot_dimension_numbers<[1], [0], [0], [1], [0, 0, 1, 1], [], []>} : vector<8x128xf32>, vector<128x512xf32>, vector<8x512xf32> -> vector<8x512xf32>
    %255 = arith.addf %252, %254 : vector<8x512xf32>
    %256 = vector.extract_strided_slice %255 {offsets = [0, 0], sizes = [8, 128], strides = [1, 1]} : vector<8x512xf32> to vector<8x128xf32>
    %257 = arith.negf %256 : vector<8x128xf32>
    %258 = math.exp %257 : vector<8x128xf32>
    %cst_79 = arith.constant 1.000000e+00 : f32
    %259 = vector.broadcast %cst_79 : f32 to vector<8x128xf32>
    %260 = arith.addf %259, %258 : vector<8x128xf32>
    %261 = arith.divf %259, %260 : vector<8x128xf32>
    %262 = vector.extract_strided_slice %255 {offsets = [0, 128], sizes = [8, 128], strides = [1, 1]} : vector<8x512xf32> to vector<8x128xf32>
    %263 = arith.negf %262 : vector<8x128xf32>
    %264 = math.exp %263 : vector<8x128xf32>
    %cst_80 = arith.constant 1.000000e+00 : f32
    %265 = vector.broadcast %cst_80 : f32 to vector<8x128xf32>
    %266 = arith.addf %265, %264 : vector<8x128xf32>
    %267 = arith.divf %265, %266 : vector<8x128xf32>
    %268 = vector.extract_strided_slice %255 {offsets = [0, 256], sizes = [8, 128], strides = [1, 1]} : vector<8x512xf32> to vector<8x128xf32>
    %269 = math.tanh %268 : vector<8x128xf32>
    %270 = vector.extract_strided_slice %255 {offsets = [0, 384], sizes = [8, 128], strides = [1, 1]} : vector<8x512xf32> to vector<8x128xf32>
    %271 = arith.negf %270 : vector<8x128xf32>
    %272 = math.exp %271 : vector<8x128xf32>
    %cst_81 = arith.constant 1.000000e+00 : f32
    %273 = vector.broadcast %cst_81 : f32 to vector<8x128xf32>
    %274 = arith.addf %273, %272 : vector<8x128xf32>
    %275 = arith.divf %273, %274 : vector<8x128xf32>
    %276 = arith.mulf %267, %243 : vector<8x128xf32>
    %277 = arith.mulf %261, %269 : vector<8x128xf32>
    %278 = arith.addf %276, %277 : vector<8x128xf32>
    %279 = math.tanh %278 : vector<8x128xf32>
    %280 = arith.mulf %275, %279 : vector<8x128xf32>
    %281 = arith.index_cast %c7_i32 : i32 to index
    %c0_82 = arith.constant 0 : index
    %c0_83 = arith.constant 0 : index
    %282 = vector.load %arg5[%281, %c0_82, %c0_83] : memref<8x8x128xf32, #tpu.memory_space<vmem>>, vector<1x8x128xf32>
    %283 = vector.shape_cast %282 : vector<1x8x128xf32> to vector<8x128xf32>
    %284 = vector.shape_cast %280 : vector<8x128xf32> to vector<1x8x128xf32>
    tpu.vector_store %arg5[%281, %c0_82, %c0_83], %284 {strides = array<i32>} : memref<8x8x128xf32, #tpu.memory_space<vmem>>, vector<1x8x128xf32>,
    %c8_i32 = arith.constant 8 : i32
    %c0_84 = arith.constant 0 : index
    %c0_85 = arith.constant 0 : index
    %285 = vector.load %arg8[%c0_84, %c0_85] : memref<8x128xf32, #tpu.memory_space<vmem>>, vector<8x128xf32>
    tpu.vector_store %arg8[%c0_84, %c0_85], %280 {strides = array<i32>} : memref<8x128xf32, #tpu.memory_space<vmem>>, vector<8x128xf32>,
    %c0_86 = arith.constant 0 : index
    %c0_87 = arith.constant 0 : index
    %286 = vector.load %arg9[%c0_86, %c0_87] : memref<8x128xf32, #tpu.memory_space<vmem>>, vector<8x128xf32>
    tpu.vector_store %arg9[%c0_86, %c0_87], %278 {strides = array<i32>} : memref<8x128xf32, #tpu.memory_space<vmem>>, vector<8x128xf32>,
    %c0_88 = arith.constant 0 : index
    %c0_89 = arith.constant 0 : index
    %287 = vector.load %arg6[%c0_88, %c0_89] : memref<8x128xf32, #tpu.memory_space<vmem>>, vector<8x128xf32>
    tpu.vector_store %arg6[%c0_88, %c0_89], %280 {strides = array<i32>} : memref<8x128xf32, #tpu.memory_space<vmem>>, vector<8x128xf32>,
    %c0_90 = arith.constant 0 : index
    %c0_91 = arith.constant 0 : index
    %288 = vector.load %arg7[%c0_90, %c0_91] : memref<8x128xf32, #tpu.memory_space<vmem>>, vector<8x128xf32>
    tpu.vector_store %arg7[%c0_90, %c0_91], %278 {strides = array<i32>} : memref<8x128xf32, #tpu.memory_space<vmem>>, vector<8x128xf32>,
    return
  }
  func.func @transform_0(%arg0: i32) -> (i32, i32, i32) {
    %c0_i32 = arith.constant 0 : i32
    %c0_i32_0 = arith.constant 0 : i32
    %c0_i32_1 = arith.constant 0 : i32
    return %arg0, %c0_i32, %c0_i32_0 : i32, i32, i32
  }
  func.func @transform_1(%arg0: i32) -> (i32, i32) {
    %c0_i32 = arith.constant 0 : i32
    %c0_i32_0 = arith.constant 0 : i32
    %c0_i32_1 = arith.constant 0 : i32
    return %c0_i32, %c0_i32_0 : i32, i32
  }
  func.func @transform_2(%arg0: i32) -> (i32, i32) {
    %c0_i32 = arith.constant 0 : i32
    %c0_i32_0 = arith.constant 0 : i32
    %c0_i32_1 = arith.constant 0 : i32
    return %c0_i32, %c0_i32_0 : i32, i32
  }
  func.func @transform_3(%arg0: i32) -> (i32, i32) {
    %c0_i32 = arith.constant 0 : i32
    %c0_i32_0 = arith.constant 0 : i32
    %c0_i32_1 = arith.constant 0 : i32
    return %c0_i32, %c0_i32_0 : i32, i32
  }
  func.func @transform_4(%arg0: i32) -> (i32, i32, i32) {
    %c0_i32 = arith.constant 0 : i32
    %c0_i32_0 = arith.constant 0 : i32
    %c0_i32_1 = arith.constant 0 : i32
    return %arg0, %c0_i32, %c0_i32_0 : i32, i32, i32
  }
  func.func @transform_5(%arg0: i32) -> (i32, i32) {
    %c0_i32 = arith.constant 0 : i32
    %c0_i32_0 = arith.constant 0 : i32
    %c0_i32_1 = arith.constant 0 : i32
    return %c0_i32, %c0_i32_0 : i32, i32
  }
  func.func @transform_6(%arg0: i32) -> (i32, i32) {
    %c0_i32 = arith.constant 0 : i32
    %c0_i32_0 = arith.constant 0 : i32
    %c0_i32_1 = arith.constant 0 : i32
    return %c0_i32, %c0_i32_0 : i32, i32
  }
}

module attributes {stable_mosaic.version = 11 : i64} {
  func.func @_matmul_bias_kernel(%arg0: i32, %arg1: memref<64x128xf32, #tpu.memory_space<vmem>>, %arg2: memref<128x128xf32, #tpu.memory_space<vmem>>, %arg3: memref<1x128xf32, #tpu.memory_space<vmem>>, %arg4: memref<64x128xf32, #tpu.memory_space<vmem>>) attributes {dimension_semantics = [#tpu.dimension_semantics<parallel>], iteration_bounds = array<i64: 1>, scalar_prefetch = 0 : i64, scratch_operands = 0 : i64, tpu.core_type = #tpu.core_type<tc>, window_params = [{transform_indices = @transform_0, window_bounds = array<i64: 64, 128>}, {pipeline_mode = #tpu.pipeline_mode<synchronous>, transform_indices = @transform_1, window_bounds = array<i64: 128, 128>}, {pipeline_mode = #tpu.pipeline_mode<synchronous>, transform_indices = @transform_2, window_bounds = array<i64: 1, 128>}, {transform_indices = @transform_3, window_bounds = array<i64: 64, 128>}]} {
    %c0 = arith.constant 0 : index
    %c0_0 = arith.constant 0 : index
    %0 = vector.load %arg1[%c0, %c0_0] : memref<64x128xf32, #tpu.memory_space<vmem>>, vector<64x128xf32>
    %c0_1 = arith.constant 0 : index
    %c0_2 = arith.constant 0 : index
    %1 = vector.load %arg2[%c0_1, %c0_2] : memref<128x128xf32, #tpu.memory_space<vmem>>, vector<128x128xf32>
    %cst = arith.constant dense<0.000000e+00> : vector<64x128xf32>
    %2 = tpu.matmul %0, %1, %cst {dimension_numbers = #tpu.dot_dimension_numbers<[1], [0], [0], [1], [0, 0, 1, 1], [], []>} : vector<64x128xf32>, vector<128x128xf32>, vector<64x128xf32> -> vector<64x128xf32>
    %c0_3 = arith.constant 0 : index
    %c0_4 = arith.constant 0 : index
    %3 = vector.load %arg3[%c0_3, %c0_4] : memref<1x128xf32, #tpu.memory_space<vmem>>, vector<1x128xf32>
    %4 = vector.broadcast %3 : vector<1x128xf32> to vector<64x128xf32>
    %5 = arith.addf %2, %4 : vector<64x128xf32>
    %c0_5 = arith.constant 0 : index
    %c0_6 = arith.constant 0 : index
    %6 = vector.load %arg4[%c0_5, %c0_6] : memref<64x128xf32, #tpu.memory_space<vmem>>, vector<64x128xf32>
    tpu.vector_store %arg4[%c0_5, %c0_6], %5 {strides = array<i32>} : memref<64x128xf32, #tpu.memory_space<vmem>>, vector<64x128xf32>,
    return
  }
  func.func @transform_0(%arg0: i32) -> (i32, i32) {
    %c0_i32 = arith.constant 0 : i32
    %c0_i32_0 = arith.constant 0 : i32
    return %arg0, %c0_i32 : i32, i32
  }
  func.func @transform_1(%arg0: i32) -> (i32, i32) {
    %c0_i32 = arith.constant 0 : i32
    %c0_i32_0 = arith.constant 0 : i32
    %c0_i32_1 = arith.constant 0 : i32
    return %c0_i32, %c0_i32_0 : i32, i32
  }
  func.func @transform_2(%arg0: i32) -> (i32, i32) {
    %c0_i32 = arith.constant 0 : i32
    %c0_i32_0 = arith.constant 0 : i32
    %c0_i32_1 = arith.constant 0 : i32
    return %c0_i32, %c0_i32_0 : i32, i32
  }
  func.func @transform_3(%arg0: i32) -> (i32, i32) {
    %c0_i32 = arith.constant 0 : i32
    %c0_i32_0 = arith.constant 0 : i32
    return %arg0, %c0_i32 : i32, i32
  }
}

</mosaic_0001>

<bundles_post_ra>
// kernel: dkt_forward.9
= control target key start
LH: loop header
LB: loop body
LE: loop exit
PB: predicated region body
PF: predicated region fallthrough
CT: control target
= control target key end

     0   :  { %s398_s1 = inlined_call_operand.vmem [shape: f32[128,128], index: 1, kind: input, shape index: {}]   ;;  %s399_s0 = inlined_call_operand.vmem [shape: f32[64,128], index: 0, kind: input, shape index: {}]   ;;  %s400_s2 = inlined_call_operand.vmem [shape: f32[1,128], index: 2, kind: input, shape index: {}]   ;;  %s401_s3 = inlined_call_operand.vmem [shape: f32[64,128], index: 3, kind: output, shape index: {}]  }
   0x1   :  { %v22_v0 = vld [vmem:[%s398_s1] sm:$0xff]  ;;  %v23_v1 = vld [vmem:[%s398_s1 + $0x8] sm:$0xff]  ;;  %v24_v2 = vld [vmem:[%s398_s1 + $0x10] sm:$0xff] }
   0x2   :  { %v231_v3 = vpack.c.bf16 %v23_v1, %v22_v0  ;;  %v25_v4 = vld [vmem:[%s398_s1 + $0x18] sm:$0xff]  ;;  %v26_v6 = vld [vmem:[%s398_s1 + $0x20] sm:$0xff]  ;;  %v27_v7 = vld [vmem:[%s398_s1 + $0x28] sm:$0xff] }
   0x3   :  { %v235_v5 = vpack.c.bf16 %v25_v4, %v24_v2  ;;  %v239_v8 = vpack.c.bf16 %v27_v7, %v26_v6  ;;  %v14_v9 = vld [vmem:[%s399_s0] sm:$0xff]  ;;  %v28_v11 = vld [vmem:[%s398_s1 + $0x30] sm:$0xff]  ;;  %v29_v12 = vld [vmem:[%s398_s1 + $0x38] sm:$0xff] }
   0x4   :  { %232 = vmatprep.subr.bf16.mxu0 %v231_v3  ;;  %263 = vmatprep.subr.bf16.mxu1 %v231_v3  ;;  %v18_v10 = vld [vmem:[%s399_s0 + $0x20] sm:$0xff]  ;;  %v243_v13 = vpack.c.bf16 %v29_v12, %v28_v11  ;;  %v31_v15 = vld [vmem:[%s398_s1 + $0x48] sm:$0xff]  ;;  %v32_v17 = vld [vmem:[%s398_s1 + $0x50] sm:$0xff] }
   0x5   :  { %234 = vmatpush3.bf16.msra.mxu0 %v231_v3  ;;  %271 = vmatpush3.bf16.msra.mxu1 %v231_v3  ;;  %v30_v14 = vld [vmem:[%s398_s1 + $0x40] sm:$0xff]  ;;  %v33_v18 = vld [vmem:[%s398_s1 + $0x58] sm:$0xff]  ;;  %v35_v21 = vld [vmem:[%s398_s1 + $0x68] sm:$0xff] }
   0x6   :  { %236 = vmatprep.subr.bf16.mxu0 %v235_v5  ;;  %264 = vmatprep.subr.bf16.mxu1 %v235_v5  ;;  %v247_v16 = vpack.c.bf16 %v31_v15, %v30_v14  ;;  %v251_v19 = vpack.c.bf16 %v33_v18, %v32_v17  ;;  %v34_v20 = vld [vmem:[%s398_s1 + $0x60] sm:$0xff]  ;;  %v36_v23 = vld [vmem:[%s398_s1 + $0x70] sm:$0xff]  ;;  %v37_v24 = vld [vmem:[%s398_s1 + $0x78] sm:$0xff] }
   0x7   :  { %219 = vmatprep.mubr.f32.mxu0 %v14_v9  ;;  %225 = vmatprep.mubr.f32.mxu1 %v18_v10  ;;  %v255_v22 = vpack.c.bf16 %v35_v21, %v34_v20  ;;  %v259_v25 = vpack.c.bf16 %v37_v24, %v36_v23  ;;  %v15_v26 = vld [vmem:[%s399_s0 + $0x8] sm:$0xff]  ;;  %v16_v28 = vld [vmem:[%s399_s0 + $0x10] sm:$0xff]  ;;  %v17_v30 = vld [vmem:[%s399_s0 + $0x18] sm:$0xff] }
   0x8   :  { %v19_v27 = vld [vmem:[%s399_s0 + $0x28] sm:$0xff]  ;;  %v20_v29 = vld [vmem:[%s399_s0 + $0x30] sm:$0xff]  ;;  %v21_v31 = vld [vmem:[%s399_s0 + $0x38] sm:$0xff] }
   0x9   :  { %238 = vmatpush3.bf16.msra.mxu0 %v235_v5  ;;  %272 = vmatpush3.bf16.msra.mxu1 %v235_v5  ;;  %v162_v32 = vld [vmem:[%s400_s2] ss:$0 sm:$0xff] }
   0xa   :  { %240 = vmatprep.subr.bf16.mxu0 %v239_v8  ;;  %265 = vmatprep.subr.bf16.mxu1 %v239_v8 }
   0xd   :  { %242 = vmatpush3.bf16.msra.mxu0 %v239_v8  ;;  %273 = vmatpush3.bf16.msra.mxu1 %v239_v8 }
   0xe   :  { %244 = vmatprep.subr.bf16.mxu0 %v243_v13  ;;  %266 = vmatprep.subr.bf16.mxu1 %v243_v13 }
  0x11   :  { %246 = vmatpush3.bf16.msra.mxu0 %v243_v13  ;;  %274 = vmatpush3.bf16.msra.mxu1 %v243_v13 }
  0x12   :  { %248 = vmatprep.subr.bf16.mxu0 %v247_v16  ;;  %267 = vmatprep.subr.bf16.mxu1 %v247_v16 }
  0x15   :  { %250 = vmatpush3.bf16.msra.mxu0 %v247_v16  ;;  %275 = vmatpush3.bf16.msra.mxu1 %v247_v16 }
  0x16   :  { %252 = vmatprep.subr.bf16.mxu0 %v251_v19  ;;  %268 = vmatprep.subr.bf16.mxu1 %v251_v19 }
  0x19   :  { %254 = vmatpush3.bf16.msra.mxu0 %v251_v19  ;;  %276 = vmatpush3.bf16.msra.mxu1 %v251_v19 }
  0x1a   :  { %256 = vmatprep.subr.bf16.mxu0 %v255_v22  ;;  %269 = vmatprep.subr.bf16.mxu1 %v255_v22 }
  0x1d   :  { %258 = vmatpush3.bf16.msra.mxu0 %v255_v22  ;;  %277 = vmatpush3.bf16.msra.mxu1 %v255_v22 }
  0x1e   :  { %260 = vmatprep.subr.bf16.mxu0 %v259_v25  ;;  %270 = vmatprep.subr.bf16.mxu1 %v259_v25 }
  0x21   :  { %262 = vmatpush3.bf16.msra.mxu0 %v259_v25  ;;  %278 = vmatpush3.bf16.msra.mxu1 %v259_v25 }
  0x24   :  { %220 = vmatmul.mubr.f32.vlgmr.msra.gmra.mrb[0].mxu0 %v15_v26  ;;  %226 = vmatmul.mubr.f32.vlgmr.msra.gmra.mrb[0].mxu1 %v19_v27 }
  0x25   :  { %222 = vmatprep.mubr.f32.mxu0 %v16_v28  ;;  %228 = vmatprep.mubr.f32.mxu1 %v20_v29 }
  0x28   :  { %223 = vmatmul.mubr.f32.gmra.mrb[2].mxu0 %v17_v30  ;;  %229 = vmatmul.mubr.f32.gmra.mrb[2].mxu1 %v21_v31 }
  0xf7   :  { %v221_v33 = vpop.f32.mrb[0].mxu0  ;;  %v227_v34 = vpop.f32.mrb[0].mxu1 }
  0xf8   :  { %v117_v35 = vadd.f32 %v221_v33, %v162_v32  ;;  %v137_v36 = vadd.f32 %v227_v34, %v162_v32  ;;  %v111_v37 = vpop.f32.mrb[1].mxu0  ;;  %v131_v38 = vpop.f32.mrb[1].mxu1 }
  0xf9   :  { %v112_v39 = vadd.f32 %v162_v32, %v111_v37  ;;  %v132_v40 = vadd.f32 %v162_v32, %v131_v38 }
  0xfa   :  { %151 = vst [vmem:[%s401_s3 + $0x8] sm:$0xff] %v117_v35  ;;  %155 = vst [vmem:[%s401_s3 + $0x28] sm:$0xff] %v137_v36 }
  0xfb   :  { %150 = vst [vmem:[%s401_s3] sm:$0xff] %v112_v39  ;;  %154 = vst [vmem:[%s401_s3 + $0x20] sm:$0xff] %v132_v40  ;;  %v224_v41 = vpop.f32.mrb[2].mxu0  ;;  %v230_v42 = vpop.f32.mrb[2].mxu1 }
  0xfc   :  { %v127_v43 = vadd.f32 %v224_v41, %v162_v32  ;;  %v147_v44 = vadd.f32 %v230_v42, %v162_v32  ;;  %v121_v45 = vpop.f32.mrb[3].mxu0  ;;  %v141_v46 = vpop.f32.mrb[3].mxu1 }
  0xfd   :  { %v122_v47 = vadd.f32 %v162_v32, %v121_v45  ;;  %v142_v48 = vadd.f32 %v162_v32, %v141_v46 }
  0xfe   :  { %153 = vst [vmem:[%s401_s3 + $0x18] sm:$0xff] %v127_v43  ;;  %157 = vst [vmem:[%s401_s3 + $0x38] sm:$0xff] %v147_v44 }
  0xff   :  { %152 = vst [vmem:[%s401_s3 + $0x10] sm:$0xff] %v122_v47  ;;  %156 = vst [vmem:[%s401_s3 + $0x30] sm:$0xff] %v142_v48 }

// kernel: dkt_forward.5
= control target key start
LH: loop header
LB: loop body
LE: loop exit
PB: predicated region body
PF: predicated region fallthrough
CT: control target
= control target key end

     0   :  { %v380_v3 = vmov 0.0   ;;  %vm60_vm0 = vcmask 261120   ;;  %v40_v33 = vlaneseq  ;;  %s644_s1 = inlined_call_operand.vmem [shape: f32[32,512], index: 1, kind: input, shape index: {}]   ;;  %s645_s0 = inlined_call_operand.vmem [shape: f32[64,32], index: 0, kind: input, shape index: {}]   ;;  %s646_s2 = inlined_call_operand.vmem [shape: f32[1,512], index: 2, kind: input, shape index: {}]   ;;  %s647_s3 = inlined_call_operand.vmem [shape: f32[64,512], index: 3, kind: output, shape index: {}]  }
   0x1   :  { %v23_v0 = vld [vmem:[%s644_s1 + $0x8] sm:$0xff]  ;;  %v25_v2 = vld [vmem:[%s644_s1 + $0x18] sm:$0xff]  ;;  %149 = vmatprep.mubr.f32.mxu0 %v380_v3  ;;  %262 = vmatprep.mubr.f32.mxu1 %v380_v3  ;;  %v22_v6 = vld [vmem:[%s644_s1] sm:$0xff] }
   0x2   :  { %v27_v1 = vld [vmem:[%s644_s1 + $0x28] sm:$0xff]  ;;  %v29_v5 = vld [vmem:[%s644_s1 + $0x38] sm:$0xff]  ;;  %v26_v7 = vld [vmem:[%s644_s1 + $0x20] sm:$0xff]  ;;  %v41_v34 = vshrl.u32 %v40_v33, 7 }
   0x3   :  { %v363_v4 = vpack.c.bf16 %v27_v1, %v23_v0  ;;  %v371_v8 = vpack.c.bf16 %v29_v5, %v25_v2  ;;  %v365_v9 = vpack.c.bf16 %v26_v7, %v22_v6  ;;  %v24_v10 = vld [vmem:[%s644_s1 + $0x10] sm:$0xff]  ;;  %v31_v12 = vld [vmem:[%s644_s1 + $0x48] sm:$0xff]  ;;  %v33_v15 = vld [vmem:[%s644_s1 + $0x58] sm:$0xff] }
   0x4   :  { %v28_v11 = vld [vmem:[%s644_s1 + $0x30] sm:$0xff]  ;;  %v35_v14 = vld [vmem:[%s644_s1 + $0x68] sm:$0xff]  ;;  %v37_v16 = vld [vmem:[%s644_s1 + $0x78] sm:$0xff]  ;;  %v42_v35 = vsub.s32 0, %v41_v34  ;;  %v50_v37 = vsub.s32 2, %v41_v34  ;;  %v46_v38 = vsub.s32 1, %v41_v34 }
   0x5   :  { %364 = vmatprep.subr.bf16.mxu0 %v363_v4  ;;  %v373_v13 = vpack.c.bf16 %v28_v11, %v24_v10  ;;  %372 = vmatprep.subr.bf16.mxu1 %v371_v8  ;;  %v367_v17 = vpack.c.bf16 %v35_v14, %v31_v12  ;;  %v375_v18 = vpack.c.bf16 %v37_v16, %v33_v15  ;;  %v30_v19 = vld [vmem:[%s644_s1 + $0x40] sm:$0xff]  ;;  %v32_v21 = vld [vmem:[%s644_s1 + $0x50] sm:$0xff]  ;;  %v15_v26 = vld [vmem:[%s645_s0 + $0x8] sm:$0xff]  ;;  %v54_v39 = vsub.s32 3, %v41_v34 }
   0x6   :  { %366 = vmatpush1.bf16.msra.mxu0 %v365_v9  ;;  %v34_v20 = vld [vmem:[%s644_s1 + $0x60] sm:$0xff]  ;;  %v36_v23 = vld [vmem:[%s644_s1 + $0x70] sm:$0xff]  ;;  %v17_v28 = vld [vmem:[%s645_s0 + $0x18] sm:$0xff] }
   0x7   :  { %374 = vmatpush1.bf16.msra.mxu1 %v373_v13  ;;  %v369_v22 = vpack.c.bf16 %v34_v20, %v30_v19  ;;  %368 = vmatprep.subr.bf16.mxu0 %v367_v17  ;;  %v377_v24 = vpack.c.bf16 %v36_v23, %v32_v21  ;;  %v14_v25 = vld [vmem:[%s645_s0] sm:$0xff]  ;;  %v16_v27 = vld [vmem:[%s645_s0 + $0x10] sm:$0xff]  ;;  %v19_v30 = vld [vmem:[%s645_s0 + $0x28] sm:$0xff] }
   0x8   :  { %376 = vmatprep.subr.bf16.mxu1 %v375_v18  ;;  %v18_v29 = vld [vmem:[%s645_s0 + $0x20] sm:$0xff]  ;;  %v20_v31 = vld [vmem:[%s645_s0 + $0x30] sm:$0xff]  ;;  %v21_v32 = vld [vmem:[%s645_s0 + $0x38] sm:$0xff] }
   0x9   :  { %v38_v36 = vld [vmem:[%s646_s2] sm:$0xf] }
   0xa   :  { %370 = vmatpush1.bf16.msra.mxu0 %v369_v22  ;;  %v508_v40 = vrot.slane %v38_v36, %v42_v35  ;;  %v510_v41 = vrot.slane %v38_v36, %v50_v37  ;;  %v512_v42 = vrot.slane %v38_v36, %v46_v38  ;;  %v514_v43 = vrot.slane %v38_v36, %v54_v39 }
   0xb   :  { %378 = vmatpush1.bf16.msra.mxu1 %v377_v24 }
   0xd   :  { %347 = vmatmul.mubr.msk.f32.vlgmr.msra.gmra.mrb[0].mxu0 %vm60_vm0, %v14_v25 }
   0xe   :  { %355 = vmatmul.mubr.msk.f32.vlgmr.msra.gmra.mrb[0].mxu1 %vm60_vm0, %v14_v25  ;;  %155 = vmatprep.mubr.f32.mxu0 %v380_v3 }
   0xf   :  { %268 = vmatprep.mubr.f32.mxu1 %v380_v3 }
  0x11   :  { %348 = vmatmul.mubr.msk.f32.gmra.mrb[2].mxu0 %vm60_vm0, %v15_v26 }
  0x12   :  { %356 = vmatmul.mubr.msk.f32.gmra.mrb[2].mxu1 %vm60_vm0, %v15_v26  ;;  %161 = vmatprep.mubr.f32.mxu0 %v380_v3 }
  0x13   :  { %274 = vmatprep.mubr.f32.mxu1 %v380_v3 }
  0x15   :  { %349 = vmatmul.mubr.msk.f32.gmra.mrb[4].mxu0 %vm60_vm0, %v16_v27 }
  0x16   :  { %357 = vmatmul.mubr.msk.f32.gmra.mrb[4].mxu1 %vm60_vm0, %v16_v27  ;;  %167 = vmatprep.mubr.f32.mxu0 %v380_v3 }
  0x17   :  { %280 = vmatprep.mubr.f32.mxu1 %v380_v3 }
  0x19   :  { %350 = vmatmul.mubr.msk.f32.gmra.mrb[6].mxu0 %vm60_vm0, %v17_v28 }
  0x1a   :  { %358 = vmatmul.mubr.msk.f32.gmra.mrb[6].mxu1 %vm60_vm0, %v17_v28  ;;  %173 = vmatprep.mubr.f32.mxu0 %v380_v3 }
  0x1b   :  { %286 = vmatprep.mubr.f32.mxu1 %v380_v3 }
  0x1d   :  { %351 = vmatmul.mubr.msk.f32.gmra.mrb[8].mxu0 %vm60_vm0, %v18_v29 }
  0x1e   :  { %359 = vmatmul.mubr.msk.f32.gmra.mrb[8].mxu1 %vm60_vm0, %v18_v29  ;;  %179 = vmatprep.mubr.f32.mxu0 %v380_v3 }
  0x1f   :  { %292 = vmatprep.mubr.f32.mxu1 %v380_v3 }
  0x21   :  { %352 = vmatmul.mubr.msk.f32.gmra.mrb[10].mxu0 %vm60_vm0, %v19_v30 }
  0x22   :  { %360 = vmatmul.mubr.msk.f32.gmra.mrb[10].mxu1 %vm60_vm0, %v19_v30  ;;  %185 = vmatprep.mubr.f32.mxu0 %v380_v3 }
  0x23   :  { %298 = vmatprep.mubr.f32.mxu1 %v380_v3 }
  0x25   :  { %353 = vmatmul.mubr.msk.f32.gmra.mrb[12].mxu0 %vm60_vm0, %v20_v31 }
  0x26   :  { %361 = vmatmul.mubr.msk.f32.gmra.mrb[12].mxu1 %vm60_vm0, %v20_v31  ;;  %191 = vmatprep.mubr.f32.mxu0 %v380_v3 }
  0x27   :  { %304 = vmatprep.mubr.f32.mxu1 %v380_v3 }
  0x29   :  { %354 = vmatmul.mubr.msk.f32.gmra.mrb[14].mxu0 %vm60_vm0, %v21_v32 }
  0x2a   :  { %362 = vmatmul.mubr.msk.f32.gmra.mrb[14].mxu1 %vm60_vm0, %v21_v32 }
  0xe0   :  { %v151_v44 = vpop.f32.mrb[0].mxu0 }
  0xe1   :  { %v152_v45 = vadd.f32 %v151_v44, %v508_v40  ;;  %v264_v46 = vpop.f32.mrb[0].mxu1  ;;  %v153_v47 = vpop.f32.mrb[1].mxu0 }
  0xe2   :  { %v265_v48 = vadd.f32 %v264_v46, %v510_v41  ;;  %v154_v49 = vadd.f32 %v153_v47, %v512_v42  ;;  %v266_v50 = vpop.f32.mrb[1].mxu1 }
  0xe3   :  { %311 = vst [vmem:[%s647_s3] sm:$0xff] %v152_v45  ;;  %v267_v51 = vadd.f32 %v266_v50, %v514_v43 }
  0xe4   :  { %313 = vst [vmem:[%s647_s3 + $0x10] sm:$0xff] %v265_v48  ;;  %312 = vst [vmem:[%s647_s3 + $0x8] sm:$0xff] %v154_v49  ;;  %v157_v52 = vpop.f32.mrb[2].mxu0 }
  0xe5   :  { %314 = vst [vmem:[%s647_s3 + $0x18] sm:$0xff] %v267_v51  ;;  %v158_v53 = vadd.f32 %v157_v52, %v508_v40  ;;  %v270_v54 = vpop.f32.mrb[2].mxu1  ;;  %v159_v55 = vpop.f32.mrb[3].mxu0 }
  0xe6   :  { %v271_v56 = vadd.f32 %v270_v54, %v510_v41  ;;  %v160_v57 = vadd.f32 %v159_v55, %v512_v42  ;;  %v272_v58 = vpop.f32.mrb[3].mxu1 }
  0xe7   :  { %315 = vst [vmem:[%s647_s3 + $0x20] sm:$0xff] %v158_v53  ;;  %v273_v59 = vadd.f32 %v272_v58, %v514_v43 }
  0xe8   :  { %317 = vst [vmem:[%s647_s3 + $0x30] sm:$0xff] %v271_v56  ;;  %316 = vst [vmem:[%s647_s3 + $0x28] sm:$0xff] %v160_v57  ;;  %v163_v60 = vpop.f32.mrb[4].mxu0 }
  0xe9   :  { %318 = vst [vmem:[%s647_s3 + $0x38] sm:$0xff] %v273_v59  ;;  %v164_v61 = vadd.f32 %v163_v60, %v508_v40  ;;  %v276_v62 = vpop.f32.mrb[4].mxu1  ;;  %v165_v63 = vpop.f32.mrb[5].mxu0 }
  0xea   :  { %v277_v0 = vadd.f32 %v276_v62, %v510_v41  ;;  %v166_v1 = vadd.f32 %v165_v63, %v512_v42  ;;  %v278_v2 = vpop.f32.mrb[5].mxu1 }
  0xeb   :  { %319 = vst [vmem:[%s647_s3 + $0x40] sm:$0xff] %v164_v61  ;;  %v279_v3 = vadd.f32 %v278_v2, %v514_v43 }
  0xec   :  { %321 = vst [vmem:[%s647_s3 + $0x50] sm:$0xff] %v277_v0  ;;  %320 = vst [vmem:[%s647_s3 + $0x48] sm:$0xff] %v166_v1  ;;  %v169_v4 = vpop.f32.mrb[6].mxu0 }
  0xed   :  { %322 = vst [vmem:[%s647_s3 + $0x58] sm:$0xff] %v279_v3  ;;  %v170_v5 = vadd.f32 %v169_v4, %v508_v40  ;;  %v282_v6 = vpop.f32.mrb[6].mxu1  ;;  %v171_v7 = vpop.f32.mrb[7].mxu0 }
  0xee   :  { %v283_v8 = vadd.f32 %v282_v6, %v510_v41  ;;  %v172_v9 = vadd.f32 %v171_v7, %v512_v42  ;;  %v284_v10 = vpop.f32.mrb[7].mxu1 }
  0xef   :  { %323 = vst [vmem:[%s647_s3 + $0x60] sm:$0xff] %v170_v5  ;;  %v285_v11 = vadd.f32 %v284_v10, %v514_v43 }
  0xf0   :  { %325 = vst [vmem:[%s647_s3 + $0x70] sm:$0xff] %v283_v8  ;;  %324 = vst [vmem:[%s647_s3 + $0x68] sm:$0xff] %v172_v9  ;;  %v175_v12 = vpop.f32.mrb[8].mxu0 }
  0xf1   :  { %326 = vst [vmem:[%s647_s3 + $0x78] sm:$0xff] %v285_v11  ;;  %v176_v13 = vadd.f32 %v175_v12, %v508_v40  ;;  %v288_v14 = vpop.f32.mrb[8].mxu1  ;;  %v177_v15 = vpop.f32.mrb[9].mxu0 }
  0xf2   :  { %v289_v16 = vadd.f32 %v288_v14, %v510_v41  ;;  %v178_v17 = vadd.f32 %v177_v15, %v512_v42  ;;  %v290_v18 = vpop.f32.mrb[9].mxu1 }
  0xf3   :  { %327 = vst [vmem:[%s647_s3 + $0x80] sm:$0xff] %v176_v13  ;;  %v291_v19 = vadd.f32 %v290_v18, %v514_v43 }
  0xf4   :  { %329 = vst [vmem:[%s647_s3 + $0x90] sm:$0xff] %v289_v16  ;;  %328 = vst [vmem:[%s647_s3 + $0x88] sm:$0xff] %v178_v17  ;;  %v181_v20 = vpop.f32.mrb[10].mxu0 }
  0xf5   :  { %330 = vst [vmem:[%s647_s3 + $0x98] sm:$0xff] %v291_v19  ;;  %v182_v21 = vadd.f32 %v181_v20, %v508_v40  ;;  %v294_v22 = vpop.f32.mrb[10].mxu1  ;;  %v183_v23 = vpop.f32.mrb[11].mxu0 }
  0xf6   :  { %v295_v24 = vadd.f32 %v294_v22, %v510_v41  ;;  %v184_v25 = vadd.f32 %v183_v23, %v512_v42  ;;  %v296_v26 = vpop.f32.mrb[11].mxu1 }
  0xf7   :  { %331 = vst [vmem:[%s647_s3 + $0xa0] sm:$0xff] %v182_v21  ;;  %v297_v27 = vadd.f32 %v296_v26, %v514_v43 }
  0xf8   :  { %333 = vst [vmem:[%s647_s3 + $0xb0] sm:$0xff] %v295_v24  ;;  %332 = vst [vmem:[%s647_s3 + $0xa8] sm:$0xff] %v184_v25  ;;  %v187_v28 = vpop.f32.mrb[12].mxu0 }
  0xf9   :  { %334 = vst [vmem:[%s647_s3 + $0xb8] sm:$0xff] %v297_v27  ;;  %v188_v29 = vadd.f32 %v187_v28, %v508_v40  ;;  %v300_v30 = vpop.f32.mrb[12].mxu1  ;;  %v189_v31 = vpop.f32.mrb[13].mxu0 }
  0xfa   :  { %v301_v32 = vadd.f32 %v300_v30, %v510_v41  ;;  %v190_v33 = vadd.f32 %v189_v31, %v512_v42  ;;  %v302_v34 = vpop.f32.mrb[13].mxu1 }
  0xfb   :  { %335 = vst [vmem:[%s647_s3 + $0xc0] sm:$0xff] %v188_v29  ;;  %v303_v35 = vadd.f32 %v302_v34, %v514_v43 }
  0xfc   :  { %337 = vst [vmem:[%s647_s3 + $0xd0] sm:$0xff] %v301_v32  ;;  %336 = vst [vmem:[%s647_s3 + $0xc8] sm:$0xff] %v190_v33  ;;  %v193_v36 = vpop.f32.mrb[14].mxu0 }
  0xfd   :  { %338 = vst [vmem:[%s647_s3 + $0xd8] sm:$0xff] %v303_v35  ;;  %v194_v37 = vadd.f32 %v193_v36, %v508_v40  ;;  %v306_v38 = vpop.f32.mrb[14].mxu1  ;;  %v195_v39 = vpop.f32.mrb[15].mxu0 }
  0xfe   :  { %v307_v44 = vadd.f32 %v306_v38, %v510_v41  ;;  %v196_v45 = vadd.f32 %v195_v39, %v512_v42  ;;  %v308_v46 = vpop.f32.mrb[15].mxu1 }
  0xff   :  { %339 = vst [vmem:[%s647_s3 + $0xe0] sm:$0xff] %v194_v37  ;;  %v309_v47 = vadd.f32 %v308_v46, %v514_v43 }
 0x100   :  { %341 = vst [vmem:[%s647_s3 + $0xf0] sm:$0xff] %v307_v44  ;;  %340 = vst [vmem:[%s647_s3 + $0xe8] sm:$0xff] %v196_v45 }
 0x101   :  { %342 = vst [vmem:[%s647_s3 + $0xf8] sm:$0xff] %v309_v47 }

// kernel: dkt_forward.7
= control target key start
LH: loop header
LB: loop body
LE: loop exit
PB: predicated region body
PF: predicated region fallthrough
CT: control target
= control target key end

     0   :  { %v435_v3 = vmov 0.0   ;;  %s827_s1 = inlined_call_operand.vmem [shape: f32[128,512], index: 1, kind: input, shape index: {}]   ;;  %s828_s0 = inlined_call_operand.vmem [shape: f32[64,128], index: 0, kind: input, shape index: {}]   ;;  %s829_s2 = inlined_call_operand.vmem [shape: f32[1,512], index: 2, kind: input, shape index: {}]   ;;  %s830_s3 = inlined_call_operand.vmem [shape: f32[64,512], index: 3, kind: output, shape index: {}]  }
   0x1   :  { %v23_v0 = vld [vmem:[%s827_s1 + $0x8] sm:$0xff]  ;;  %v25_v2 = vld [vmem:[%s827_s1 + $0x18] sm:$0xff]  ;;  %172 = vmatprep.mubr.f32.mxu0 %v435_v3  ;;  %285 = vmatprep.mubr.f32.mxu1 %v435_v3  ;;  %v22_v6 = vld [vmem:[%s827_s1] sm:$0xff] }
   0x2   :  { %v27_v1 = vld [vmem:[%s827_s1 + $0x28] sm:$0xff]  ;;  %v29_v5 = vld [vmem:[%s827_s1 + $0x38] sm:$0xff]  ;;  %v26_v7 = vld [vmem:[%s827_s1 + $0x20] sm:$0xff] }
   0x3   :  { %v370_v4 = vpack.c.bf16 %v27_v1, %v23_v0  ;;  %v402_v8 = vpack.c.bf16 %v29_v5, %v25_v2  ;;  %v372_v9 = vpack.c.bf16 %v26_v7, %v22_v6  ;;  %v24_v10 = vld [vmem:[%s827_s1 + $0x10] sm:$0xff]  ;;  %v31_v12 = vld [vmem:[%s827_s1 + $0x48] sm:$0xff]  ;;  %v33_v15 = vld [vmem:[%s827_s1 + $0x58] sm:$0xff] }
   0x4   :  { %v28_v11 = vld [vmem:[%s827_s1 + $0x30] sm:$0xff]  ;;  %v35_v14 = vld [vmem:[%s827_s1 + $0x68] sm:$0xff]  ;;  %v37_v16 = vld [vmem:[%s827_s1 + $0x78] sm:$0xff] }
   0x5   :  { %371 = vmatprep.subr.bf16.mxu0 %v370_v4  ;;  %v404_v13 = vpack.c.bf16 %v28_v11, %v24_v10  ;;  %403 = vmatprep.subr.bf16.mxu1 %v402_v8  ;;  %v374_v17 = vpack.c.bf16 %v35_v14, %v31_v12  ;;  %v406_v18 = vpack.c.bf16 %v37_v16, %v33_v15  ;;  %v30_v19 = vld [vmem:[%s827_s1 + $0x40] sm:$0xff]  ;;  %v32_v21 = vld [vmem:[%s827_s1 + $0x50] sm:$0xff]  ;;  %v39_v24 = vld [vmem:[%s827_s1 + $0x88] sm:$0xff] }
   0x6   :  { %373 = vmatpush1.bf16.msra.mxu0 %v372_v9  ;;  %v34_v20 = vld [vmem:[%s827_s1 + $0x60] sm:$0xff]  ;;  %v36_v23 = vld [vmem:[%s827_s1 + $0x70] sm:$0xff]  ;;  %v43_v25 = vld [vmem:[%s827_s1 + $0xa8] sm:$0xff] }
   0x7   :  { %405 = vmatpush1.bf16.msra.mxu1 %v404_v13  ;;  %v376_v22 = vpack.c.bf16 %v34_v20, %v30_v19  ;;  %375 = vmatprep.subr.bf16.mxu0 %v374_v17  ;;  %v408_v26 = vpack.c.bf16 %v36_v23, %v32_v21  ;;  %v378_v27 = vpack.c.bf16 %v43_v25, %v39_v24  ;;  %v41_v28 = vld [vmem:[%s827_s1 + $0x98] sm:$0xff]  ;;  %v38_v30 = vld [vmem:[%s827_s1 + $0x80] sm:$0xff]  ;;  %v40_v33 = vld [vmem:[%s827_s1 + $0x90] sm:$0xff] }
   0x8   :  { %407 = vmatprep.subr.bf16.mxu1 %v406_v18  ;;  %v45_v29 = vld [vmem:[%s827_s1 + $0xb8] sm:$0xff]  ;;  %v42_v32 = vld [vmem:[%s827_s1 + $0xa0] sm:$0xff]  ;;  %v44_v34 = vld [vmem:[%s827_s1 + $0xb0] sm:$0xff] }
   0x9   :  { %v410_v31 = vpack.c.bf16 %v45_v29, %v41_v28  ;;  %v380_v35 = vpack.c.bf16 %v42_v32, %v38_v30  ;;  %v47_v36 = vld [vmem:[%s827_s1 + $0xc8] sm:$0xff]  ;;  %v49_v38 = vld [vmem:[%s827_s1 + $0xd8] sm:$0xff]  ;;  %v412_v39 = vpack.c.bf16 %v44_v34, %v40_v33  ;;  %v46_v42 = vld [vmem:[%s827_s1 + $0xc0] sm:$0xff] }
   0xa   :  { %377 = vmatpush1.bf16.msra.mxu0 %v376_v22  ;;  %v51_v37 = vld [vmem:[%s827_s1 + $0xe8] sm:$0xff]  ;;  %v53_v41 = vld [vmem:[%s827_s1 + $0xf8] sm:$0xff]  ;;  %v50_v43 = vld [vmem:[%s827_s1 + $0xe0] sm:$0xff] }
   0xb   :  { %409 = vmatpush1.bf16.msra.mxu1 %v408_v26  ;;  %379 = vmatprep.subr.bf16.mxu0 %v378_v27  ;;  %v382_v40 = vpack.c.bf16 %v51_v37, %v47_v36  ;;  %v414_v44 = vpack.c.bf16 %v53_v41, %v49_v38  ;;  %v48_v45 = vld [vmem:[%s827_s1 + $0xd0] sm:$0xff]  ;;  %v55_v47 = vld [vmem:[%s827_s1 + $0x108] sm:$0xff]  ;;  %v57_v49 = vld [vmem:[%s827_s1 + $0x118] sm:$0xff]  ;;  %v384_v51 = vpack.c.bf16 %v50_v43, %v46_v42  ;;  %v88_v42 = vlaneseq }
   0xc   :  { %411 = vmatprep.subr.bf16.mxu1 %v410_v31  ;;  %v52_v46 = vld [vmem:[%s827_s1 + $0xf0] sm:$0xff]  ;;  %v59_v48 = vld [vmem:[%s827_s1 + $0x128] sm:$0xff]  ;;  %v61_v50 = vld [vmem:[%s827_s1 + $0x138] sm:$0xff] }
   0xd   :  { %v416_v52 = vpack.c.bf16 %v52_v46, %v48_v45  ;;  %v386_v53 = vpack.c.bf16 %v59_v48, %v55_v47  ;;  %v54_v54 = vld [vmem:[%s827_s1 + $0x100] sm:$0xff]  ;;  %v56_v56 = vld [vmem:[%s827_s1 + $0x110] sm:$0xff]  ;;  %v418_v57 = vpack.c.bf16 %v61_v50, %v57_v49  ;;  %v63_v59 = vld [vmem:[%s827_s1 + $0x148] sm:$0xff]  ;;  %v89_v43 = vshrl.u32 %v88_v42, 7 }
   0xe   :  { %381 = vmatpush1.bf16.msra.mxu0 %v380_v35  ;;  %v58_v55 = vld [vmem:[%s827_s1 + $0x120] sm:$0xff]  ;;  %v60_v58 = vld [vmem:[%s827_s1 + $0x130] sm:$0xff]  ;;  %v67_v60 = vld [vmem:[%s827_s1 + $0x168] sm:$0xff] }
   0xf   :  { %413 = vmatpush1.bf16.msra.mxu1 %v412_v39  ;;  %383 = vmatprep.subr.bf16.mxu0 %v382_v40  ;;  %v65_v61 = vld [vmem:[%s827_s1 + $0x158] sm:$0xff]  ;;  %v388_v63 = vpack.c.bf16 %v58_v55, %v54_v54  ;;  %v420_v0 = vpack.c.bf16 %v60_v58, %v56_v56  ;;  %v390_v1 = vpack.c.bf16 %v67_v60, %v63_v59  ;;  %v62_v2 = vld [vmem:[%s827_s1 + $0x140] sm:$0xff]  ;;  %v64_v5 = vld [vmem:[%s827_s1 + $0x150] sm:$0xff]  ;;  %v98_v46 = vsub.s32 2, %v89_v43 }
  0x10   :  { %415 = vmatprep.subr.bf16.mxu1 %v414_v44  ;;  %v69_v62 = vld [vmem:[%s827_s1 + $0x178] sm:$0xff]  ;;  %v66_v4 = vld [vmem:[%s827_s1 + $0x160] sm:$0xff]  ;;  %v68_v7 = vld [vmem:[%s827_s1 + $0x170] sm:$0xff]  ;;  %v90_v44 = vsub.s32 0, %v89_v43  ;;  %v94_v47 = vsub.s32 1, %v89_v43  ;;  %v102_v48 = vsub.s32 3, %v89_v43 }
  0x11   :  { %v422_v6 = vpack.c.bf16 %v69_v62, %v65_v61  ;;  %v71_v8 = vld [vmem:[%s827_s1 + $0x188] sm:$0xff]  ;;  %v73_v10 = vld [vmem:[%s827_s1 + $0x198] sm:$0xff]  ;;  %v392_v12 = vpack.c.bf16 %v66_v4, %v62_v2  ;;  %v424_v13 = vpack.c.bf16 %v68_v7, %v64_v5  ;;  %v70_v15 = vld [vmem:[%s827_s1 + $0x180] sm:$0xff] }
  0x12   :  { %385 = vmatpush1.bf16.msra.mxu0 %v384_v51  ;;  %v75_v9 = vld [vmem:[%s827_s1 + $0x1a8] sm:$0xff]  ;;  %v77_v11 = vld [vmem:[%s827_s1 + $0x1b8] sm:$0xff]  ;;  %v74_v16 = vld [vmem:[%s827_s1 + $0x1a0] sm:$0xff] }
  0x13   :  { %417 = vmatpush1.bf16.msra.mxu1 %v416_v52  ;;  %387 = vmatprep.subr.bf16.mxu0 %v386_v53  ;;  %v394_v14 = vpack.c.bf16 %v75_v9, %v71_v8  ;;  %v72_v17 = vld [vmem:[%s827_s1 + $0x190] sm:$0xff]  ;;  %v426_v18 = vpack.c.bf16 %v77_v11, %v73_v10  ;;  %v79_v20 = vld [vmem:[%s827_s1 + $0x1c8] sm:$0xff]  ;;  %v81_v22 = vld [vmem:[%s827_s1 + $0x1d8] sm:$0xff]  ;;  %v396_v24 = vpack.c.bf16 %v74_v16, %v70_v15 }
  0x14   :  { %419 = vmatprep.subr.bf16.mxu1 %v418_v57  ;;  %v76_v19 = vld [vmem:[%s827_s1 + $0x1b0] sm:$0xff]  ;;  %v83_v21 = vld [vmem:[%s827_s1 + $0x1e8] sm:$0xff]  ;;  %v85_v23 = vld [vmem:[%s827_s1 + $0x1f8] sm:$0xff] }
  0x15   :  { %v428_v25 = vpack.c.bf16 %v76_v19, %v72_v17  ;;  %v398_v26 = vpack.c.bf16 %v83_v21, %v79_v20  ;;  %v78_v27 = vld [vmem:[%s827_s1 + $0x1c0] sm:$0xff]  ;;  %v430_v29 = vpack.c.bf16 %v85_v23, %v81_v22  ;;  %v80_v30 = vld [vmem:[%s827_s1 + $0x1d0] sm:$0xff]  ;;  %v15_v35 = vld [vmem:[%s828_s0 + $0x8] sm:$0xff] }
  0x16   :  { %389 = vmatpush1.bf16.msra.mxu0 %v388_v63  ;;  %v82_v28 = vld [vmem:[%s827_s1 + $0x1e0] sm:$0xff]  ;;  %v84_v31 = vld [vmem:[%s827_s1 + $0x1f0] sm:$0xff]  ;;  %v17_v37 = vld [vmem:[%s828_s0 + $0x18] sm:$0xff] }
  0x17   :  { %421 = vmatpush1.bf16.msra.mxu1 %v420_v0  ;;  %391 = vmatprep.subr.bf16.mxu0 %v390_v1  ;;  %v400_v32 = vpack.c.bf16 %v82_v28, %v78_v27  ;;  %v432_v33 = vpack.c.bf16 %v84_v31, %v80_v30  ;;  %v14_v34 = vld [vmem:[%s828_s0] sm:$0xff]  ;;  %v16_v36 = vld [vmem:[%s828_s0 + $0x10] sm:$0xff]  ;;  %v19_v39 = vld [vmem:[%s828_s0 + $0x28] sm:$0xff] }
  0x18   :  { %423 = vmatprep.subr.bf16.mxu1 %v422_v6  ;;  %v18_v38 = vld [vmem:[%s828_s0 + $0x20] sm:$0xff]  ;;  %v20_v40 = vld [vmem:[%s828_s0 + $0x30] sm:$0xff]  ;;  %v21_v41 = vld [vmem:[%s828_s0 + $0x38] sm:$0xff] }
  0x19   :  { %v86_v45 = vld [vmem:[%s829_s2] sm:$0xf] }
  0x1a   :  { %393 = vmatpush1.bf16.msra.mxu0 %v392_v12  ;;  %v691_v49 = vrot.slane %v86_v45, %v90_v44  ;;  %v693_v50 = vrot.slane %v86_v45, %v98_v46  ;;  %v695_v51 = vrot.slane %v86_v45, %v94_v47  ;;  %v697_v52 = vrot.slane %v86_v45, %v102_v48 }
  0x1b   :  { %425 = vmatpush1.bf16.msra.mxu1 %v424_v13  ;;  %395 = vmatprep.subr.bf16.mxu0 %v394_v14 }
  0x1c   :  { %427 = vmatprep.subr.bf16.mxu1 %v426_v18 }
  0x1e   :  { %397 = vmatpush1.bf16.msra.mxu0 %v396_v24 }
  0x1f   :  { %429 = vmatpush1.bf16.msra.mxu1 %v428_v25  ;;  %399 = vmatprep.subr.bf16.mxu0 %v398_v26 }
  0x20   :  { %431 = vmatprep.subr.bf16.mxu1 %v430_v29 }
  0x22   :  { %401 = vmatpush1.bf16.msra.mxu0 %v400_v32 }
  0x23   :  { %433 = vmatpush1.bf16.msra.mxu1 %v432_v33 }
  0x25   :  { %173 = vmatmul.mubr.f32.vlgmr.msra.gmra.mrb[0].mxu0 %v14_v34 }
  0x26   :  { %286 = vmatmul.mubr.f32.vlgmr.msra.gmra.mrb[0].mxu1 %v14_v34  ;;  %178 = vmatprep.mubr.f32.mxu0 %v435_v3 }
  0x27   :  { %291 = vmatprep.mubr.f32.mxu1 %v435_v3 }
  0x29   :  { %179 = vmatmul.mubr.f32.gmra.mrb[2].mxu0 %v15_v35 }
  0x2a   :  { %292 = vmatmul.mubr.f32.gmra.mrb[2].mxu1 %v15_v35  ;;  %184 = vmatprep.mubr.f32.mxu0 %v435_v3 }
  0x2b   :  { %297 = vmatprep.mubr.f32.mxu1 %v435_v3 }
  0x2d   :  { %185 = vmatmul.mubr.f32.gmra.mrb[4].mxu0 %v16_v36 }
  0x2e   :  { %298 = vmatmul.mubr.f32.gmra.mrb[4].mxu1 %v16_v36  ;;  %190 = vmatprep.mubr.f32.mxu0 %v435_v3 }
  0x2f   :  { %303 = vmatprep.mubr.f32.mxu1 %v435_v3 }
  0x31   :  { %191 = vmatmul.mubr.f32.gmra.mrb[6].mxu0 %v17_v37 }
  0x32   :  { %304 = vmatmul.mubr.f32.gmra.mrb[6].mxu1 %v17_v37  ;;  %196 = vmatprep.mubr.f32.mxu0 %v435_v3 }
  0x33   :  { %309 = vmatprep.mubr.f32.mxu1 %v435_v3 }
  0x35   :  { %197 = vmatmul.mubr.f32.gmra.mrb[8].mxu0 %v18_v38 }
  0x36   :  { %310 = vmatmul.mubr.f32.gmra.mrb[8].mxu1 %v18_v38  ;;  %202 = vmatprep.mubr.f32.mxu0 %v435_v3 }
  0x37   :  { %315 = vmatprep.mubr.f32.mxu1 %v435_v3 }
  0x39   :  { %203 = vmatmul.mubr.f32.gmra.mrb[10].mxu0 %v19_v39 }
  0x3a   :  { %316 = vmatmul.mubr.f32.gmra.mrb[10].mxu1 %v19_v39  ;;  %208 = vmatprep.mubr.f32.mxu0 %v435_v3 }
  0x3b   :  { %321 = vmatprep.mubr.f32.mxu1 %v435_v3 }
  0x3d   :  { %209 = vmatmul.mubr.f32.gmra.mrb[12].mxu0 %v20_v40 }
  0x3e   :  { %322 = vmatmul.mubr.f32.gmra.mrb[12].mxu1 %v20_v40  ;;  %214 = vmatprep.mubr.f32.mxu0 %v435_v3 }
  0x3f   :  { %327 = vmatprep.mubr.f32.mxu1 %v435_v3 }
  0x41   :  { %215 = vmatmul.mubr.f32.gmra.mrb[14].mxu0 %v21_v41 }
  0x42   :  { %328 = vmatmul.mubr.f32.gmra.mrb[14].mxu1 %v21_v41 }
  0xf8   :  { %v174_v3 = vpop.f32.mrb[0].mxu0 }
  0xf9   :  { %v175_v53 = vadd.f32 %v174_v3, %v691_v49  ;;  %v287_v54 = vpop.f32.mrb[0].mxu1  ;;  %v176_v55 = vpop.f32.mrb[1].mxu0 }
  0xfa   :  { %v288_v56 = vadd.f32 %v287_v54, %v693_v50  ;;  %v177_v57 = vadd.f32 %v176_v55, %v695_v51  ;;  %v289_v58 = vpop.f32.mrb[1].mxu1 }
  0xfb   :  { %334 = vst [vmem:[%s830_s3] sm:$0xff] %v175_v53  ;;  %v290_v59 = vadd.f32 %v289_v58, %v697_v52 }
  0xfc   :  { %336 = vst [vmem:[%s830_s3 + $0x10] sm:$0xff] %v288_v56  ;;  %335 = vst [vmem:[%s830_s3 + $0x8] sm:$0xff] %v177_v57  ;;  %v180_v60 = vpop.f32.mrb[2].mxu0 }
  0xfd   :  { %337 = vst [vmem:[%s830_s3 + $0x18] sm:$0xff] %v290_v59  ;;  %v181_v61 = vadd.f32 %v180_v60, %v691_v49  ;;  %v293_v62 = vpop.f32.mrb[2].mxu1  ;;  %v182_v63 = vpop.f32.mrb[3].mxu0 }
  0xfe   :  { %v294_v0 = vadd.f32 %v293_v62, %v693_v50  ;;  %v183_v1 = vadd.f32 %v182_v63, %v695_v51  ;;  %v295_v2 = vpop.f32.mrb[3].mxu1 }
  0xff   :  { %338 = vst [vmem:[%s830_s3 + $0x20] sm:$0xff] %v181_v61  ;;  %v296_v4 = vadd.f32 %v295_v2, %v697_v52 }
 0x100   :  { %340 = vst [vmem:[%s830_s3 + $0x30] sm:$0xff] %v294_v0  ;;  %339 = vst [vmem:[%s830_s3 + $0x28] sm:$0xff] %v183_v1  ;;  %v186_v5 = vpop.f32.mrb[4].mxu0 }
 0x101   :  { %341 = vst [vmem:[%s830_s3 + $0x38] sm:$0xff] %v296_v4  ;;  %v187_v6 = vadd.f32 %v186_v5, %v691_v49  ;;  %v299_v7 = vpop.f32.mrb[4].mxu1  ;;  %v188_v8 = vpop.f32.mrb[5].mxu0 }
 0x102   :  { %v300_v9 = vadd.f32 %v299_v7, %v693_v50  ;;  %v189_v10 = vadd.f32 %v188_v8, %v695_v51  ;;  %v301_v11 = vpop.f32.mrb[5].mxu1 }
 0x103   :  { %342 = vst [vmem:[%s830_s3 + $0x40] sm:$0xff] %v187_v6  ;;  %v302_v12 = vadd.f32 %v301_v11, %v697_v52 }
 0x104   :  { %344 = vst [vmem:[%s830_s3 + $0x50] sm:$0xff] %v300_v9  ;;  %343 = vst [vmem:[%s830_s3 + $0x48] sm:$0xff] %v189_v10  ;;  %v192_v13 = vpop.f32.mrb[6].mxu0 }
 0x105   :  { %345 = vst [vmem:[%s830_s3 + $0x58] sm:$0xff] %v302_v12  ;;  %v193_v14 = vadd.f32 %v192_v13, %v691_v49  ;;  %v305_v15 = vpop.f32.mrb[6].mxu1  ;;  %v194_v16 = vpop.f32.mrb[7].mxu0 }
 0x106   :  { %v306_v17 = vadd.f32 %v305_v15, %v693_v50  ;;  %v195_v18 = vadd.f32 %v194_v16, %v695_v51  ;;  %v307_v19 = vpop.f32.mrb[7].mxu1 }
 0x107   :  { %346 = vst [vmem:[%s830_s3 + $0x60] sm:$0xff] %v193_v14  ;;  %v308_v20 = vadd.f32 %v307_v19, %v697_v52 }
 0x108   :  { %348 = vst [vmem:[%s830_s3 + $0x70] sm:$0xff] %v306_v17  ;;  %347 = vst [vmem:[%s830_s3 + $0x68] sm:$0xff] %v195_v18  ;;  %v198_v21 = vpop.f32.mrb[8].mxu0 }
 0x109   :  { %349 = vst [vmem:[%s830_s3 + $0x78] sm:$0xff] %v308_v20  ;;  %v199_v22 = vadd.f32 %v198_v21, %v691_v49  ;;  %v311_v23 = vpop.f32.mrb[8].mxu1  ;;  %v200_v24 = vpop.f32.mrb[9].mxu0 }
 0x10a   :  { %v312_v25 = vadd.f32 %v311_v23, %v693_v50  ;;  %v201_v26 = vadd.f32 %v200_v24, %v695_v51  ;;  %v313_v27 = vpop.f32.mrb[9].mxu1 }
 0x10b   :  { %350 = vst [vmem:[%s830_s3 + $0x80] sm:$0xff] %v199_v22  ;;  %v314_v28 = vadd.f32 %v313_v27, %v697_v52 }
 0x10c   :  { %352 = vst [vmem:[%s830_s3 + $0x90] sm:$0xff] %v312_v25  ;;  %351 = vst [vmem:[%s830_s3 + $0x88] sm:$0xff] %v201_v26  ;;  %v204_v29 = vpop.f32.mrb[10].mxu0 }
 0x10d   :  { %353 = vst [vmem:[%s830_s3 + $0x98] sm:$0xff] %v314_v28  ;;  %v205_v30 = vadd.f32 %v204_v29, %v691_v49  ;;  %v317_v31 = vpop.f32.mrb[10].mxu1  ;;  %v206_v32 = vpop.f32.mrb[11].mxu0 }
 0x10e   :  { %v318_v33 = vadd.f32 %v317_v31, %v693_v50  ;;  %v207_v34 = vadd.f32 %v206_v32, %v695_v51  ;;  %v319_v35 = vpop.f32.mrb[11].mxu1 }
 0x10f   :  { %354 = vst [vmem:[%s830_s3 + $0xa0] sm:$0xff] %v205_v30  ;;  %v320_v36 = vadd.f32 %v319_v35, %v697_v52 }
 0x110   :  { %356 = vst [vmem:[%s830_s3 + $0xb0] sm:$0xff] %v318_v33  ;;  %355 = vst [vmem:[%s830_s3 + $0xa8] sm:$0xff] %v207_v34  ;;  %v210_v37 = vpop.f32.mrb[12].mxu0 }
 0x111   :  { %357 = vst [vmem:[%s830_s3 + $0xb8] sm:$0xff] %v320_v36  ;;  %v211_v38 = vadd.f32 %v210_v37, %v691_v49  ;;  %v323_v39 = vpop.f32.mrb[12].mxu1  ;;  %v212_v40 = vpop.f32.mrb[13].mxu0 }
 0x112   :  { %v324_v41 = vadd.f32 %v323_v39, %v693_v50  ;;  %v213_v42 = vadd.f32 %v212_v40, %v695_v51  ;;  %v325_v43 = vpop.f32.mrb[13].mxu1 }
 0x113   :  { %358 = vst [vmem:[%s830_s3 + $0xc0] sm:$0xff] %v211_v38  ;;  %v326_v44 = vadd.f32 %v325_v43, %v697_v52 }
 0x114   :  { %360 = vst [vmem:[%s830_s3 + $0xd0] sm:$0xff] %v324_v41  ;;  %359 = vst [vmem:[%s830_s3 + $0xc8] sm:$0xff] %v213_v42  ;;  %v216_v45 = vpop.f32.mrb[14].mxu0 }
 0x115   :  { %361 = vst [vmem:[%s830_s3 + $0xd8] sm:$0xff] %v326_v44  ;;  %v217_v46 = vadd.f32 %v216_v45, %v691_v49  ;;  %v329_v47 = vpop.f32.mrb[14].mxu1  ;;  %v218_v48 = vpop.f32.mrb[15].mxu0 }
 0x116   :  { %v330_v3 = vadd.f32 %v329_v47, %v693_v50  ;;  %v219_v53 = vadd.f32 %v218_v48, %v695_v51  ;;  %v331_v54 = vpop.f32.mrb[15].mxu1 }
 0x117   :  { %362 = vst [vmem:[%s830_s3 + $0xe0] sm:$0xff] %v217_v46  ;;  %v332_v55 = vadd.f32 %v331_v54, %v697_v52 }
 0x118   :  { %364 = vst [vmem:[%s830_s3 + $0xf0] sm:$0xff] %v330_v3  ;;  %363 = vst [vmem:[%s830_s3 + $0xe8] sm:$0xff] %v219_v53 }
 0x119   :  { %365 = vst [vmem:[%s830_s3 + $0xf8] sm:$0xff] %v332_v55 }

// kernel: dkt_forward.6
= control target key start
LH: loop header
LB: loop body
LE: loop exit
PB: predicated region body
PF: predicated region fallthrough
CT: control target
= control target key end

     0   :  { %v2672_v3 = vmov 0.0   ;;  %s3703_s1 = inlined_call_operand.vmem [shape: f32[128,512], index: 1, kind: input, shape index: {}]   ;;  %s3704_s2 = inlined_call_operand.vmem [shape: f32[8,128], index: 2, kind: input, shape index: {}, may-alias: {2,3}]   ;;  %s3705_s0 = inlined_call_operand.vmem [shape: f32[8,8,512], index: 0, kind: input, shape index: {}]   ;;  %s3706_s3 = inlined_call_operand.vmem [shape: f32[8,128], index: 3, kind: input, shape index: {}, may-alias: {2,3}]   ;;  %s3707_s4 = inlined_call_operand.vmem [shape: f32[8,8,128], index: 4, kind: output, shape index: {0}]   ;;  %s3708_s6 = inlined_call_operand.vmem [shape: f32[8,128], index: 6, kind: output, shape index: {2}]   ;;  %s3709_s5 = inlined_call_operand.vmem [shape: f32[8,128], index: 5, kind: output, shape index: {1}]  }
   0x1   :  { %v35_v0 = vld [vmem:[%s3703_s1 + $0x8] sm:$0xff]  ;;  %v34_v2 = vld [vmem:[%s3703_s1] sm:$0xff]  ;;  %162 = vmatprep.mubr.f32.mxu0 %v2672_v3  ;;  %233 = vmatprep.mubr.f32.mxu1 %v2672_v3  ;;  %v37_v19 = vld [vmem:[%s3703_s1 + $0x18] sm:$0xff] }
   0x2   :  { %v39_v1 = vld [vmem:[%s3703_s1 + $0x28] sm:$0xff]  ;;  %v38_v5 = vld [vmem:[%s3703_s1 + $0x20] sm:$0xff]  ;;  %v41_v20 = vld [vmem:[%s3703_s1 + $0x38] sm:$0xff] }
   0x3   :  { %v2719_v4 = vpack.c.bf16 %v39_v1, %v35_v0  ;;  %v43_v6 = vld [vmem:[%s3703_s1 + $0x48] sm:$0xff]  ;;  %v2730_v8 = vpack.c.bf16 %v38_v5, %v34_v2  ;;  %v42_v10 = vld [vmem:[%s3703_s1 + $0x40] sm:$0xff]  ;;  %v2771_v22 = vpack.c.bf16 %v41_v20, %v37_v19  ;;  %v36_v23 = vld [vmem:[%s3703_s1 + $0x10] sm:$0xff] }
   0x4   :  { %v47_v7 = vld [vmem:[%s3703_s1 + $0x68] sm:$0xff]  ;;  %v46_v11 = vld [vmem:[%s3703_s1 + $0x60] sm:$0xff]  ;;  %v40_v24 = vld [vmem:[%s3703_s1 + $0x30] sm:$0xff] }
   0x5   :  { %v2732_v9 = vpack.c.bf16 %v47_v7, %v43_v6  ;;  %v51_v12 = vld [vmem:[%s3703_s1 + $0x88] sm:$0xff]  ;;  %2032 = vmatprep.subr.bf16.mxu0 %v2719_v4  ;;  %v2748_v14 = vpack.c.bf16 %v46_v11, %v42_v10  ;;  %v50_v15 = vld [vmem:[%s3703_s1 + $0x80] sm:$0xff]  ;;  %v2779_v25 = vpack.c.bf16 %v40_v24, %v36_v23  ;;  %2064 = vmatprep.subr.bf16.mxu1 %v2771_v22  ;;  %v45_v27 = vld [vmem:[%s3703_s1 + $0x58] sm:$0xff] }
   0x6   :  { %v55_v13 = vld [vmem:[%s3703_s1 + $0xa8] sm:$0xff]  ;;  %2034 = vmatpush1.bf16.msra.mxu0 %v2730_v8  ;;  %v54_v16 = vld [vmem:[%s3703_s1 + $0xa0] sm:$0xff]  ;;  %v49_v28 = vld [vmem:[%s3703_s1 + $0x78] sm:$0xff] }
   0x7   :  { %2036 = vmatprep.subr.bf16.mxu0 %v2732_v9  ;;  %v2757_v17 = vpack.c.bf16 %v55_v13, %v51_v12  ;;  %v59_v18 = vld [vmem:[%s3703_s1 + $0xc8] sm:$0xff]  ;;  %v2782_v26 = vpack.c.bf16 %v54_v16, %v50_v15  ;;  %v44_v29 = vld [vmem:[%s3703_s1 + $0x50] sm:$0xff]  ;;  %v58_v31 = vld [vmem:[%s3703_s1 + $0xc0] sm:$0xff]  ;;  %2066 = vmatpush1.bf16.msra.mxu1 %v2779_v25  ;;  %v2804_v33 = vpack.c.bf16 %v49_v28, %v45_v27 }
   0x8   :  { %v63_v21 = vld [vmem:[%s3703_s1 + $0xe8] sm:$0xff]  ;;  %v62_v32 = vld [vmem:[%s3703_s1 + $0xe0] sm:$0xff]  ;;  %v48_v34 = vld [vmem:[%s3703_s1 + $0x70] sm:$0xff] }
   0x9   :  { %v2795_v30 = vpack.c.bf16 %v63_v21, %v59_v18  ;;  %v67_v35 = vld [vmem:[%s3703_s1 + $0x108] sm:$0xff]  ;;  %v2815_v37 = vpack.c.bf16 %v48_v34, %v44_v29  ;;  %v53_v38 = vld [vmem:[%s3703_s1 + $0x98] sm:$0xff]  ;;  %2068 = vmatprep.subr.bf16.mxu1 %v2804_v33  ;;  %v52_v40 = vld [vmem:[%s3703_s1 + $0x90] sm:$0xff]  ;;  %v2831_v42 = vpack.c.bf16 %v62_v32, %v58_v31 }
   0xa   :  { %2038 = vmatpush1.bf16.msra.mxu0 %v2748_v14  ;;  %v71_v36 = vld [vmem:[%s3703_s1 + $0x128] sm:$0xff]  ;;  %v57_v39 = vld [vmem:[%s3703_s1 + $0xb8] sm:$0xff]  ;;  %v56_v41 = vld [vmem:[%s3703_s1 + $0xb0] sm:$0xff] }
   0xb   :  { %2040 = vmatprep.subr.bf16.mxu0 %v2757_v17  ;;  %v66_v43 = vld [vmem:[%s3703_s1 + $0x100] sm:$0xff]  ;;  %v2839_v45 = vpack.c.bf16 %v57_v39, %v53_v38  ;;  %v2842_v46 = vpack.c.bf16 %v71_v36, %v67_v35  ;;  %2070 = vmatpush1.bf16.msra.mxu1 %v2815_v37  ;;  %v75_v47 = vld [vmem:[%s3703_s1 + $0x148] sm:$0xff]  ;;  %v2848_v48 = vpack.c.bf16 %v56_v41, %v52_v40  ;;  %v61_v49 = vld [vmem:[%s3703_s1 + $0xd8] sm:$0xff] }
   0xc   :  { %v70_v44 = vld [vmem:[%s3703_s1 + $0x120] sm:$0xff]  ;;  %v65_v50 = vld [vmem:[%s3703_s1 + $0xf8] sm:$0xff]  ;;  %v79_v51 = vld [vmem:[%s3703_s1 + $0x168] sm:$0xff] }
   0xd   :  { %2072 = vmatprep.subr.bf16.mxu1 %v2839_v45  ;;  %v2860_v52 = vpack.c.bf16 %v65_v50, %v61_v49  ;;  %v60_v53 = vld [vmem:[%s3703_s1 + $0xd0] sm:$0xff]  ;;  %v2869_v55 = vpack.c.bf16 %v70_v44, %v66_v43  ;;  %v69_v56 = vld [vmem:[%s3703_s1 + $0x118] sm:$0xff]  ;;  %v2878_v58 = vpack.c.bf16 %v79_v51, %v75_v47  ;;  %v74_v59 = vld [vmem:[%s3703_s1 + $0x140] sm:$0xff] }
   0xe   :  { %2042 = vmatpush1.bf16.msra.mxu0 %v2782_v26  ;;  %v64_v54 = vld [vmem:[%s3703_s1 + $0xf0] sm:$0xff]  ;;  %v73_v57 = vld [vmem:[%s3703_s1 + $0x138] sm:$0xff]  ;;  %v78_v60 = vld [vmem:[%s3703_s1 + $0x160] sm:$0xff] }
   0xf   :  { %2044 = vmatprep.subr.bf16.mxu0 %v2795_v30  ;;  %2074 = vmatpush1.bf16.msra.mxu1 %v2848_v48  ;;  %v83_v61 = vld [vmem:[%s3703_s1 + $0x188] sm:$0xff]  ;;  %v2890_v62 = vpack.c.bf16 %v64_v54, %v60_v53  ;;  %v2896_v0 = vpack.c.bf16 %v73_v57, %v69_v56  ;;  %v68_v1 = vld [vmem:[%s3703_s1 + $0x110] sm:$0xff]  ;;  %v77_v5 = vld [vmem:[%s3703_s1 + $0x158] sm:$0xff]  ;;  %v2911_v7 = vpack.c.bf16 %v78_v60, %v74_v59 }
  0x10   :  { %v87_v63 = vld [vmem:[%s3703_s1 + $0x1a8] sm:$0xff]  ;;  %2076 = vmatprep.subr.bf16.mxu1 %v2860_v52  ;;  %v72_v2 = vld [vmem:[%s3703_s1 + $0x130] sm:$0xff]  ;;  %v81_v6 = vld [vmem:[%s3703_s1 + $0x178] sm:$0xff] }
  0x11   :  { %v2914_v10 = vpack.c.bf16 %v87_v63, %v83_v61  ;;  %v82_v11 = vld [vmem:[%s3703_s1 + $0x180] sm:$0xff]  ;;  %v91_v13 = vld [vmem:[%s3703_s1 + $0x1c8] sm:$0xff]  ;;  %v2926_v15 = vpack.c.bf16 %v72_v2, %v68_v1  ;;  %v2932_v18 = vpack.c.bf16 %v81_v6, %v77_v5  ;;  %v76_v19 = vld [vmem:[%s3703_s1 + $0x150] sm:$0xff] }
  0x12   :  { %2046 = vmatpush1.bf16.msra.mxu0 %v2831_v42  ;;  %v86_v12 = vld [vmem:[%s3703_s1 + $0x1a0] sm:$0xff]  ;;  %v95_v16 = vld [vmem:[%s3703_s1 + $0x1e8] sm:$0xff]  ;;  %v80_v20 = vld [vmem:[%s3703_s1 + $0x170] sm:$0xff] }
  0x13   :  { %2048 = vmatprep.subr.bf16.mxu0 %v2842_v46  ;;  %2078 = vmatpush1.bf16.msra.mxu1 %v2890_v62  ;;  %v85_v21 = vld [vmem:[%s3703_s1 + $0x198] sm:$0xff]  ;;  %v2947_v24 = vpack.c.bf16 %v86_v12, %v82_v11  ;;  %v2950_v27 = vpack.c.bf16 %v95_v16, %v91_v13  ;;  %v90_v28 = vld [vmem:[%s3703_s1 + $0x1c0] sm:$0xff]  ;;  %v2959_v31 = vpack.c.bf16 %v80_v20, %v76_v19  ;;  %v84_v34 = vld [vmem:[%s3703_s1 + $0x190] sm:$0xff] }
  0x14   :  { %2080 = vmatprep.subr.bf16.mxu1 %v2896_v0  ;;  %v89_v23 = vld [vmem:[%s3703_s1 + $0x1b8] sm:$0xff]  ;;  %v94_v29 = vld [vmem:[%s3703_s1 + $0x1e0] sm:$0xff]  ;;  %v88_v35 = vld [vmem:[%s3703_s1 + $0x1b0] sm:$0xff] }
  0x15   :  { %v2962_v32 = vpack.c.bf16 %v89_v23, %v85_v21  ;;  %v93_v36 = vld [vmem:[%s3703_s1 + $0x1d8] sm:$0xff]  ;;  %v2977_v39 = vpack.c.bf16 %v94_v29, %v90_v28  ;;  %v2981_v40 = vpack.c.bf16 %v88_v35, %v84_v34  ;;  %v92_v43 = vld [vmem:[%s3703_s1 + $0x1d0] sm:$0xff]  ;;  %v24_v47 = vld [vmem:[%s3704_s2] sm:$0xff] }
  0x16   :  { %2050 = vmatpush1.bf16.msra.mxu0 %v2869_v55  ;;  %v97_v38 = vld [vmem:[%s3703_s1 + $0x1f8] sm:$0xff]  ;;  %v96_v44 = vld [vmem:[%s3703_s1 + $0x1f0] sm:$0xff]  ;;  %v30_v50 = vld [vmem:[%s3705_s0] sm:$0xff] }
  0x17   :  { %2052 = vmatprep.subr.bf16.mxu0 %v2878_v58  ;;  %2082 = vmatpush1.bf16.msra.mxu1 %v2926_v15  ;;  %v2984_v41 = vpack.c.bf16 %v97_v38, %v93_v36  ;;  %v2997_v49 = vpack.c.bf16 %v96_v44, %v92_v43  ;;  %v31_v51 = vld [vmem:[%s3705_s0 + $0x8] sm:$0xff]  ;;  %v33_v61 = vld [vmem:[%s3705_s0 + $0x18] sm:$0xff]  ;;  %v32_v5 = vld [vmem:[%s3705_s0 + $0x10] sm:$0xff] }
  0x18   :  { %2084 = vmatprep.subr.bf16.mxu1 %v2932_v18  ;;  %v26_v23 = vld [vmem:[%s3706_s3] sm:$0xff] }
  0x1a   :  { %2054 = vmatpush1.bf16.msra.mxu0 %v2911_v7 }
  0x1b   :  { %2056 = vmatprep.subr.bf16.mxu0 %v2914_v10  ;;  %2086 = vmatpush1.bf16.msra.mxu1 %v2959_v31 }
  0x1c   :  { %2088 = vmatprep.subr.bf16.mxu1 %v2962_v32 }
  0x1e   :  { %2058 = vmatpush1.bf16.msra.mxu0 %v2947_v24 }
  0x1f   :  { %2060 = vmatprep.subr.bf16.mxu0 %v2950_v27  ;;  %2090 = vmatpush1.bf16.msra.mxu1 %v2981_v40 }
  0x20   :  { %2092 = vmatprep.subr.bf16.mxu1 %v2984_v41 }
  0x22   :  { %2062 = vmatpush1.bf16.msra.mxu0 %v2977_v39 }
  0x23   :  { %2096 = vmatprep.subr.bf16.mxu0 %v2719_v4  ;;  %2094 = vmatpush1.bf16.msra.mxu1 %v2997_v49 }
  0x24   :  { %2128 = vmatprep.subr.bf16.mxu1 %v2771_v22 }
  0x25   :  { %163 = vmatmul.mubr.f32.vlgmr.msra.gmra.mrb[0].mxu0 %v24_v47 }
  0x26   :  { %2098 = vmatpush1.bf16.msra.mxu0 %v2730_v8  ;;  %402 = vmatprep.mubr.f32.mxu0 %v2672_v3 }
  0x27   :  { %2100 = vmatprep.subr.bf16.mxu0 %v2732_v9  ;;  %234 = vmatmul.mubr.f32.vlgmr.msra.gmra.mrb[0].mxu1 %v24_v47 }
  0x28   :  { %2130 = vmatpush1.bf16.msra.mxu1 %v2779_v25  ;;  %473 = vmatprep.mubr.f32.mxu1 %v2672_v3 }
  0x29   :  { %2132 = vmatprep.subr.bf16.mxu1 %v2804_v33 }
  0x2a   :  { %2102 = vmatpush1.bf16.msra.mxu0 %v2748_v14 }
  0x2b   :  { %2104 = vmatprep.subr.bf16.mxu0 %v2757_v17 }
  0x2c   :  { %2134 = vmatpush1.bf16.msra.mxu1 %v2815_v37 }
  0x2d   :  { %2136 = vmatprep.subr.bf16.mxu1 %v2839_v45 }
  0x2e   :  { %2106 = vmatpush1.bf16.msra.mxu0 %v2782_v26 }
  0x2f   :  { %2108 = vmatprep.subr.bf16.mxu0 %v2795_v30 }
  0x30   :  { %2138 = vmatpush1.bf16.msra.mxu1 %v2848_v48 }
  0x31   :  { %2140 = vmatprep.subr.bf16.mxu1 %v2860_v52 }
  0x32   :  { %2110 = vmatpush1.bf16.msra.mxu0 %v2831_v42 }
  0x33   :  { %2112 = vmatprep.subr.bf16.mxu0 %v2842_v46 }
  0x34   :  { %2142 = vmatpush1.bf16.msra.mxu1 %v2890_v62 }
  0x35   :  { %2144 = vmatprep.subr.bf16.mxu1 %v2896_v0 }
  0x36   :  { %2114 = vmatpush1.bf16.msra.mxu0 %v2869_v55 }
  0x37   :  { %2116 = vmatprep.subr.bf16.mxu0 %v2878_v58 }
  0x38   :  { %2146 = vmatpush1.bf16.msra.mxu1 %v2926_v15 }
  0x39   :  { %2148 = vmatprep.subr.bf16.mxu1 %v2932_v18 }
  0x3a   :  { %2118 = vmatpush1.bf16.msra.mxu0 %v2911_v7 }
  0x3b   :  { %2120 = vmatprep.subr.bf16.mxu0 %v2914_v10 }
  0x3c   :  { %2150 = vmatpush1.bf16.msra.mxu1 %v2959_v31 }
  0x3d   :  { %2152 = vmatprep.subr.bf16.mxu1 %v2962_v32 }
  0x3e   :  { %2122 = vmatpush1.bf16.msra.mxu0 %v2947_v24 }
  0x3f   :  { %2124 = vmatprep.subr.bf16.mxu0 %v2950_v27 }
  0x40   :  { %2154 = vmatpush1.bf16.msra.mxu1 %v2981_v40 }
  0x41   :  { %2156 = vmatprep.subr.bf16.mxu1 %v2984_v41 }
  0x42   :  { %2126 = vmatpush1.bf16.msra.mxu0 %v2977_v39 }
  0x43   :  { %2160 = vmatprep.subr.bf16.mxu0 %v2719_v4 }
  0x44   :  { %2158 = vmatpush1.bf16.msra.mxu1 %v2997_v49 }
  0x45   :  { %2192 = vmatprep.subr.bf16.mxu1 %v2771_v22 }
  0xf8   :  { %v164_v53 = vpop.f32.mrb[0].mxu0 }
  0xf9   :  { %v240_v54 = vadd.f32 %v164_v53, %v30_v50  ;;  %v166_v56 = vpop.f32.mrb[1].mxu0 }
  0xfa   :  { %v241_v57 = vadd.f32 %v166_v56, %v31_v51  ;;  %v235_v63 = vpop.f32.mrb[0].mxu1 }
  0xfb   :  { %v1972_v59 = vmul.f32 -1.442695, %v240_v54  ;;  %v237_v1 = vpop.f32.mrb[1].mxu1  ;;  %v242_v11 = vadd.f32 %v235_v63, %v32_v5 }
  0xfc   :  { %v1973_v60 = vmul.f32 -1.442695, %v241_v57  ;;  %v243_v2 = vadd.f32 %v237_v1, %v33_v61 }
  0xfd   :  { %2544 = vpow2.f32 %v1972_v59 }
  0xfe   :  { %2546 = vpow2.f32 %v1973_v60  ;;  %v1974_v6 = vmul.f32 -1.442695, %v243_v2 }
 0x100   :  { %2548 = vpow2.f32 %v1974_v6 }
 0x101   :  { %2550 = vtanh.f32 %v242_v11 }
 0x107   :  { %v2545_v12 = vpop.eup %2544 }
 0x108   :  { %v2547_v13 = vpop.eup %2546  ;;  %v247_v16 = vadd.f32 1.0, %v2545_v12 }
 0x109   :  { %v253_v19 = vadd.f32 1.0, %v2547_v13 }
 0x10a   :  { %2552 = vrcp.f32 %v247_v16  ;;  %v2549_v20 = vpop.eup %2548  ;;  %v800_v16 = vld [vmem:[%s3703_s1 + $0x160] sm:$0xff] }
 0x10b   :  { %2554 = vrcp.f32 %v253_v19  ;;  %v2551_v21 = vpop.eup %2550  ;;  %v260_v29 = vadd.f32 1.0, %v2549_v20  ;;  %v805_v19 = vld [vmem:[%s3703_s1 + $0x188] sm:$0xff] }
 0x10c   :  { %v809_v20 = vld [vmem:[%s3703_s1 + $0x1a8] sm:$0xff] }
 0x10d   :  { %2556 = vrcp.f32 %v260_v29  ;;  %v808_v29 = vld [vmem:[%s3703_s1 + $0x1a0] sm:$0xff] }
 0x114   :  { %v2553_v28 = vpop.eup %2552 }
 0x115   :  { %v2555_v34 = vpop.eup %2554  ;;  %v264_v35 = vmul.f32 %v2553_v28, %v2551_v21  ;;  %v804_v28 = vld [vmem:[%s3703_s1 + $0x180] sm:$0xff] }
 0x116   :  { %v263_v36 = vmul.f32 %v2555_v34, %v26_v23  ;;  %v3199_v23 = vpack.c.bf16 %v809_v20, %v805_v19  ;;  %v813_v34 = vld [vmem:[%s3703_s1 + $0x1c8] sm:$0xff]  ;;  %v1008_v19 = vld [vmem:[%s3703_s1 + $0x58] sm:$0xff] }
 0x117   :  { %v2557_v43 = vpop.eup %2556 }
 0x118   :  { %v3052_v38 = vadd.f32 %v264_v35, %v263_v36  ;;  %v817_v35 = vld [vmem:[%s3703_s1 + $0x1e8] sm:$0xff]  ;;  %v3215_v36 = vpack.c.bf16 %v808_v29, %v804_v28  ;;  %v1012_v28 = vld [vmem:[%s3703_s1 + $0x78] sm:$0xff]  ;;  %v1005_v29 = vld [vmem:[%s3703_s1 + $0x40] sm:$0xff] }
 0x11a   :  { %2558 = vtanh.f32 %v3052_v38 }
 0x124   :  { %v2559_v44 = vpop.eup %2558 }
 0x125   :  { %v267_v47 = vmul.f32 %v2559_v44, %v2557_v43  ;;  %v812_v43 = vld [vmem:[%s3703_s1 + $0x1c0] sm:$0xff] }
 0x126   :  { %v816_v44 = vld [vmem:[%s3703_s1 + $0x1e0] sm:$0xff] }
 0x127   :  { %268 = vst [vmem:[%s3707_s4] sm:$0xff] %v267_v47  ;;  %403 = vmatmul.mubr.f32.vlgmr.msra.gmra.mrb[2].mxu0 %v267_v47  ;;  %474 = vmatmul.mubr.f32.vlgmr.msra.gmra.mrb[2].mxu1 %v267_v47  ;;  %v3227_v47 = vpack.c.bf16 %v816_v44, %v812_v43  ;;  %v1007_v44 = vld [vmem:[%s3703_s1 + $0x50] sm:$0xff] }
 0x128   :  { %2162 = vmatpush1.bf16.msra.mxu0 %v2730_v8  ;;  %2194 = vmatpush1.bf16.msra.mxu1 %v2779_v25 }
 0x129   :  { %2164 = vmatprep.subr.bf16.mxu0 %v2732_v9  ;;  %2196 = vmatprep.subr.bf16.mxu1 %v2804_v33 }
 0x12a   :  { %643 = vmatprep.mubr.f32.mxu0 %v2672_v3  ;;  %714 = vmatprep.mubr.f32.mxu1 %v2672_v3 }
 0x12c   :  { %2166 = vmatpush1.bf16.msra.mxu0 %v2748_v14  ;;  %2198 = vmatpush1.bf16.msra.mxu1 %v2815_v37 }
 0x12d   :  { %2168 = vmatprep.subr.bf16.mxu0 %v2757_v17  ;;  %2200 = vmatprep.subr.bf16.mxu1 %v2839_v45 }
 0x130   :  { %2170 = vmatpush1.bf16.msra.mxu0 %v2782_v26  ;;  %2202 = vmatpush1.bf16.msra.mxu1 %v2848_v48  ;;  %v1975_v26 = vld [vmem:[%s3705_s0 + $0x20] sm:$0xff] }
 0x131   :  { %2172 = vmatprep.subr.bf16.mxu0 %v2795_v30  ;;  %2204 = vmatprep.subr.bf16.mxu1 %v2860_v52  ;;  %v1976_v30 = vld [vmem:[%s3705_s0 + $0x28] sm:$0xff] }
 0x134   :  { %2174 = vmatpush1.bf16.msra.mxu0 %v2831_v42  ;;  %2206 = vmatpush1.bf16.msra.mxu1 %v2890_v62 }
 0x135   :  { %2176 = vmatprep.subr.bf16.mxu0 %v2842_v46  ;;  %2208 = vmatprep.subr.bf16.mxu1 %v2896_v0 }
 0x138   :  { %2178 = vmatpush1.bf16.msra.mxu0 %v2869_v55  ;;  %2210 = vmatpush1.bf16.msra.mxu1 %v2926_v15 }
 0x139   :  { %2180 = vmatprep.subr.bf16.mxu0 %v2878_v58  ;;  %2212 = vmatprep.subr.bf16.mxu1 %v2932_v18 }
 0x13c   :  { %2182 = vmatpush1.bf16.msra.mxu0 %v2911_v7  ;;  %2214 = vmatpush1.bf16.msra.mxu1 %v2959_v31 }
 0x13d   :  { %2184 = vmatprep.subr.bf16.mxu0 %v2914_v10  ;;  %2216 = vmatprep.subr.bf16.mxu1 %v2962_v32 }
 0x140   :  { %2186 = vmatpush1.bf16.msra.mxu0 %v2947_v24  ;;  %2218 = vmatpush1.bf16.msra.mxu1 %v2981_v40 }
 0x141   :  { %2188 = vmatprep.subr.bf16.mxu0 %v2950_v27  ;;  %2220 = vmatprep.subr.bf16.mxu1 %v2984_v41 }
 0x144   :  { %2190 = vmatpush1.bf16.msra.mxu0 %v2977_v39  ;;  %2222 = vmatpush1.bf16.msra.mxu1 %v2997_v49  ;;  %v1977_v39 = vld [vmem:[%s3705_s0 + $0x30] sm:$0xff] }
 0x145   :  { %2224 = vmatprep.subr.bf16.mxu0 %v2719_v4  ;;  %2256 = vmatprep.subr.bf16.mxu1 %v2771_v22  ;;  %v1978_v4 = vld [vmem:[%s3705_s0 + $0x38] sm:$0xff] }
 0x1fa   :  { %v404_v42 = vpop.f32.mrb[2].mxu0  ;;  %v475_v46 = vpop.f32.mrb[2].mxu1 }
 0x1fb   :  { %v480_v55 = vadd.f32 %v1975_v26, %v404_v42  ;;  %v406_v58 = vpop.f32.mrb[3].mxu0  ;;  %v477_v7 = vpop.f32.mrb[3].mxu1  ;;  %v482_v51 = vadd.f32 %v1977_v39, %v475_v46  ;;  %v1983_v26 = vld [vmem:[%s3705_s0 + $0x40] sm:$0xff]  ;;  %v1985_v39 = vld [vmem:[%s3705_s0 + $0x50] sm:$0xff] }
 0x1fc   :  { %v481_v10 = vadd.f32 %v1976_v30, %v406_v58  ;;  %v483_v22 = vadd.f32 %v1978_v4, %v477_v7  ;;  %v1984_v30 = vld [vmem:[%s3705_s0 + $0x48] sm:$0xff]  ;;  %v1986_v4 = vld [vmem:[%s3705_s0 + $0x58] sm:$0xff] }
 0x1fd   :  { %v1979_v24 = vmul.f32 -1.442695, %v480_v55 }
 0x1fe   :  { %v1980_v27 = vmul.f32 -1.442695, %v481_v10  ;;  %v1981_v50 = vmul.f32 -1.442695, %v483_v22 }
 0x1ff   :  { %2560 = vpow2.f32 %v1979_v24 }
 0x200   :  { %2562 = vpow2.f32 %v1980_v27 }
 0x201   :  { %2564 = vpow2.f32 %v1981_v50 }
 0x202   :  { %2566 = vtanh.f32 %v482_v51 }
 0x209   :  { %v2561_v53 = vpop.eup %2560 }
 0x20a   :  { %v2563_v54 = vpop.eup %2562  ;;  %v487_v56 = vadd.f32 1.0, %v2561_v53 }
 0x20b   :  { %v493_v57 = vadd.f32 1.0, %v2563_v54  ;;  %v2565_v59 = vpop.eup %2564 }
 0x20c   :  { %2568 = vrcp.f32 %v487_v56  ;;  %v2567_v60 = vpop.eup %2566  ;;  %v500_v2 = vadd.f32 1.0, %v2565_v59 }
 0x20d   :  { %2570 = vrcp.f32 %v493_v57 }
 0x20e   :  { %2572 = vrcp.f32 %v500_v2 }
 0x216   :  { %v2569_v61 = vpop.eup %2568 }
 0x217   :  { %v2571_v63 = vpop.eup %2570  ;;  %v504_v1 = vmul.f32 %v2569_v61, %v2567_v60 }
 0x218   :  { %v503_v5 = vmul.f32 %v2571_v63, %v3052_v38  ;;  %v2573_v11 = vpop.eup %2572  ;;  %v3218_v38 = vpack.c.bf16 %v817_v35, %v813_v34  ;;  %v1009_v34 = vld [vmem:[%s3703_s1 + $0x60] sm:$0xff]  ;;  %v3308_v35 = vpack.c.bf16 %v1012_v28, %v1008_v19  ;;  %v1059_v19 = vld [vmem:[%s3703_s1 + $0x1f0] sm:$0xff] }
 0x219   :  { %v3310_v43 = vpack.c.bf16 %v1009_v34, %v1005_v29  ;;  %v1991_v29 = vld [vmem:[%s3705_s0 + $0x60] sm:$0xff]  ;;  %v1992_v34 = vld [vmem:[%s3705_s0 + $0x68] sm:$0xff] }
 0x21a   :  { %v3105_v6 = vadd.f32 %v504_v1, %v503_v5 }
 0x21c   :  { %2574 = vtanh.f32 %v3105_v6 }
 0x226   :  { %v2575_v12 = vpop.eup %2574 }
 0x227   :  { %v507_v13 = vmul.f32 %v2575_v12, %v2573_v11 }
 0x229   :  { %1982 = vst [vmem:[%s3707_s4 + $0x8] sm:$0xff] %v507_v13  ;;  %644 = vmatmul.mubr.f32.vlgmr.msra.gmra.mrb[4].mxu0 %v507_v13  ;;  %715 = vmatmul.mubr.f32.vlgmr.msra.gmra.mrb[4].mxu1 %v507_v13 }
 0x22a   :  { %2226 = vmatpush1.bf16.msra.mxu0 %v2730_v8  ;;  %2258 = vmatpush1.bf16.msra.mxu1 %v2779_v25  ;;  %v772_v8 = vld [vmem:[%s3703_s1 + $0x80] sm:$0xff]  ;;  %v785_v25 = vld [vmem:[%s3703_s1 + $0xe8] sm:$0xff] }
 0x22b   :  { %2228 = vmatprep.subr.bf16.mxu0 %v2732_v9  ;;  %2260 = vmatprep.subr.bf16.mxu1 %v2804_v33  ;;  %v776_v9 = vld [vmem:[%s3703_s1 + $0xa0] sm:$0xff] }
 0x22c   :  { %884 = vmatprep.mubr.f32.mxu0 %v2672_v3  ;;  %955 = vmatprep.mubr.f32.mxu1 %v2672_v3 }
 0x22e   :  { %2230 = vmatpush1.bf16.msra.mxu0 %v2748_v14  ;;  %2262 = vmatpush1.bf16.msra.mxu1 %v2815_v37  ;;  %v3138_v14 = vpack.c.bf16 %v776_v9, %v772_v8  ;;  %v780_v37 = vld [vmem:[%s3703_s1 + $0xc0] sm:$0xff]  ;;  %v1002_v9 = vld [vmem:[%s3703_s1 + $0x28] sm:$0xff] }
 0x22f   :  { %2232 = vmatprep.subr.bf16.mxu0 %v2757_v17  ;;  %2264 = vmatprep.subr.bf16.mxu1 %v2839_v45  ;;  %v781_v17 = vld [vmem:[%s3703_s1 + $0xc8] sm:$0xff]  ;;  %v784_v45 = vld [vmem:[%s3703_s1 + $0xe0] sm:$0xff] }
 0x230   :  { %v3147_v33 = vpack.c.bf16 %v785_v25, %v781_v17  ;;  %v1000_v17 = vld [vmem:[%s3703_s1 + $0x18] sm:$0xff] }
 0x232   :  { %2266 = vmatpush1.bf16.msra.mxu1 %v2848_v48  ;;  %2234 = vmatpush1.bf16.msra.mxu0 %v3138_v14  ;;  %v3155_v48 = vpack.c.bf16 %v784_v45, %v780_v37  ;;  %v1004_v37 = vld [vmem:[%s3703_s1 + $0x38] sm:$0xff]  ;;  %v997_v45 = vld [vmem:[%s3703_s1] sm:$0xff] }
 0x233   :  { %2268 = vmatprep.subr.bf16.mxu1 %v2860_v52  ;;  %2236 = vmatprep.subr.bf16.mxu0 %v3147_v33  ;;  %v789_v52 = vld [vmem:[%s3703_s1 + $0x108] sm:$0xff] }
 0x236   :  { %2270 = vmatpush1.bf16.msra.mxu1 %v2890_v62  ;;  %2238 = vmatpush1.bf16.msra.mxu0 %v3155_v48  ;;  %v793_v62 = vld [vmem:[%s3703_s1 + $0x128] sm:$0xff] }
 0x237   :  { %2272 = vmatprep.subr.bf16.mxu1 %v2896_v0  ;;  %v3165_v0 = vpack.c.bf16 %v793_v62, %v789_v52  ;;  %v1001_v52 = vld [vmem:[%s3703_s1 + $0x20] sm:$0xff]  ;;  %v3272_v62 = vpack.c.bf16 %v1004_v37, %v1000_v17  ;;  %v1047_v37 = vld [vmem:[%s3703_s1 + $0x190] sm:$0xff] }
 0x239   :  { %2240 = vmatprep.subr.bf16.mxu0 %v3165_v0 }
 0x23a   :  { %2274 = vmatpush1.bf16.msra.mxu1 %v2926_v15  ;;  %v788_v15 = vld [vmem:[%s3703_s1 + $0x100] sm:$0xff] }
 0x23b   :  { %2276 = vmatprep.subr.bf16.mxu1 %v2932_v18  ;;  %v792_v18 = vld [vmem:[%s3703_s1 + $0x120] sm:$0xff] }
 0x23e   :  { %2278 = vmatpush1.bf16.msra.mxu1 %v2959_v31  ;;  %v3173_v31 = vpack.c.bf16 %v792_v18, %v788_v15  ;;  %v3274_v15 = vpack.c.bf16 %v1001_v52, %v997_v45  ;;  %v999_v18 = vld [vmem:[%s3703_s1 + $0x10] sm:$0xff]  ;;  %v1056_v52 = vld [vmem:[%s3703_s1 + $0x1d8] sm:$0xff] }
 0x23f   :  { %2280 = vmatprep.subr.bf16.mxu1 %v2962_v32  ;;  %v797_v32 = vld [vmem:[%s3703_s1 + $0x148] sm:$0xff]  ;;  %v1051_v45 = vld [vmem:[%s3703_s1 + $0x1b0] sm:$0xff] }
 0x240   :  { %2242 = vmatpush1.bf16.msra.mxu0 %v3173_v31 }
 0x242   :  { %2282 = vmatpush1.bf16.msra.mxu1 %v2981_v40  ;;  %v801_v40 = vld [vmem:[%s3703_s1 + $0x168] sm:$0xff] }
 0x243   :  { %2284 = vmatprep.subr.bf16.mxu1 %v2984_v41  ;;  %v796_v41 = vld [vmem:[%s3703_s1 + $0x140] sm:$0xff] }
 0x244   :  { %v3197_v21 = vpack.c.bf16 %v800_v16, %v796_v41  ;;  %v1006_v41 = vld [vmem:[%s3703_s1 + $0x48] sm:$0xff] }
 0x245   :  { %v1010_v16 = vld [vmem:[%s3703_s1 + $0x68] sm:$0xff] }
 0x246   :  { %2286 = vmatpush1.bf16.msra.mxu1 %v2997_v49  ;;  %v3186_v49 = vpack.c.bf16 %v801_v40, %v797_v32  ;;  %v1003_v32 = vld [vmem:[%s3703_s1 + $0x30] sm:$0xff]  ;;  %v3297_v20 = vpack.c.bf16 %v1010_v16, %v1006_v41 }
 0x247   :  { %v3283_v40 = vpack.c.bf16 %v1003_v32, %v999_v18  ;;  %2320 = vmatprep.subr.bf16.mxu1 %v3272_v62  ;;  %v1060_v18 = vld [vmem:[%s3703_s1 + $0x1f8] sm:$0xff]  ;;  %v3433_v32 = vpack.c.bf16 %v1051_v45, %v1047_v37  ;;  %v1055_v16 = vld [vmem:[%s3703_s1 + $0x1d0] sm:$0xff] }
 0x248   :  { %2244 = vmatprep.subr.bf16.mxu0 %v3186_v49  ;;  %v3436_v41 = vpack.c.bf16 %v1060_v18, %v1056_v52  ;;  %v3447_v28 = vpack.c.bf16 %v1059_v19, %v1055_v16 }
 0x249   :  { %2246 = vmatpush1.bf16.msra.mxu0 %v3197_v21 }
 0x24a   :  { %2248 = vmatprep.subr.bf16.mxu0 %v3199_v23 }
 0x24d   :  { %2250 = vmatpush1.bf16.msra.mxu0 %v3215_v36 }
 0x24e   :  { %2252 = vmatprep.subr.bf16.mxu0 %v3218_v38 }
 0x251   :  { %2254 = vmatpush1.bf16.msra.mxu0 %v3227_v47 }
 0x2fc   :  { %v645_v42 = vpop.f32.mrb[4].mxu0  ;;  %v716_v46 = vpop.f32.mrb[4].mxu1 }
 0x2fd   :  { %v721_v55 = vadd.f32 %v1983_v26, %v645_v42  ;;  %v647_v58 = vpop.f32.mrb[5].mxu0  ;;  %v718_v7 = vpop.f32.mrb[5].mxu1  ;;  %v723_v51 = vadd.f32 %v1985_v39, %v716_v46  ;;  %v1011_v26 = vld [vmem:[%s3703_s1 + $0x70] sm:$0xff]  ;;  %v1014_v42 = vld [vmem:[%s3703_s1 + $0x88] sm:$0xff]  ;;  %v1028_v39 = vld [vmem:[%s3703_s1 + $0xf8] sm:$0xff] }
 0x2fe   :  { %v722_v10 = vadd.f32 %v1984_v30, %v647_v58  ;;  %v724_v22 = vadd.f32 %v1986_v4, %v718_v7  ;;  %v3319_v30 = vpack.c.bf16 %v1011_v26, %v1007_v44  ;;  %v1018_v46 = vld [vmem:[%s3703_s1 + $0xa8] sm:$0xff]  ;;  %v1020_v7 = vld [vmem:[%s3703_s1 + $0xb8] sm:$0xff] }
 0x2ff   :  { %v1987_v24 = vmul.f32 -1.442695, %v721_v55  ;;  %v1016_v55 = vld [vmem:[%s3703_s1 + $0x98] sm:$0xff]  ;;  %v3333_v58 = vpack.c.bf16 %v1018_v46, %v1014_v42 }
 0x300   :  { %v1988_v27 = vmul.f32 -1.442695, %v722_v10  ;;  %v1989_v50 = vmul.f32 -1.442695, %v724_v22  ;;  %v1015_v10 = vld [vmem:[%s3703_s1 + $0x90] sm:$0xff]  ;;  %v1024_v22 = vld [vmem:[%s3703_s1 + $0xd8] sm:$0xff] }
 0x301   :  { %2576 = vpow2.f32 %v1987_v24  ;;  %v1019_v24 = vld [vmem:[%s3703_s1 + $0xb0] sm:$0xff] }
 0x302   :  { %2578 = vpow2.f32 %v1988_v27  ;;  %v3344_v27 = vpack.c.bf16 %v1020_v7, %v1016_v55  ;;  %v3346_v4 = vpack.c.bf16 %v1019_v24, %v1015_v10 }
 0x303   :  { %2580 = vpow2.f32 %v1989_v50  ;;  %v3359_v50 = vpack.c.bf16 %v1028_v39, %v1024_v22  ;;  %v1994_v22 = vld [vmem:[%s3705_s0 + $0x78] sm:$0xff] }
 0x304   :  { %2582 = vtanh.f32 %v723_v51  ;;  %v1023_v51 = vld [vmem:[%s3703_s1 + $0xd0] sm:$0xff] }
 0x30b   :  { %v2577_v53 = vpop.eup %2576 }
 0x30c   :  { %v2579_v54 = vpop.eup %2578  ;;  %v728_v56 = vadd.f32 1.0, %v2577_v53  ;;  %v1027_v53 = vld [vmem:[%s3703_s1 + $0xf0] sm:$0xff] }
 0x30d   :  { %v734_v57 = vadd.f32 1.0, %v2579_v54  ;;  %v2581_v59 = vpop.eup %2580  ;;  %v3367_v54 = vpack.c.bf16 %v1027_v53, %v1023_v51  ;;  %v1993_v51 = vld [vmem:[%s3705_s0 + $0x70] sm:$0xff] }
 0x30e   :  { %2584 = vrcp.f32 %v728_v56  ;;  %v2583_v60 = vpop.eup %2582  ;;  %v741_v2 = vadd.f32 1.0, %v2581_v59  ;;  %v1032_v56 = vld [vmem:[%s3703_s1 + $0x118] sm:$0xff] }
 0x30f   :  { %2586 = vrcp.f32 %v734_v57  ;;  %v1036_v57 = vld [vmem:[%s3703_s1 + $0x138] sm:$0xff] }
 0x310   :  { %2588 = vrcp.f32 %v741_v2  ;;  %v3379_v59 = vpack.c.bf16 %v1036_v57, %v1032_v56  ;;  %v1044_v2 = vld [vmem:[%s3703_s1 + $0x178] sm:$0xff] }
 0x318   :  { %v2585_v61 = vpop.eup %2584 }
 0x319   :  { %v2587_v63 = vpop.eup %2586  ;;  %v745_v1 = vmul.f32 %v2585_v61, %v2583_v60  ;;  %v1031_v60 = vld [vmem:[%s3703_s1 + $0x110] sm:$0xff] }
 0x31a   :  { %v744_v5 = vmul.f32 %v2587_v63, %v3105_v6  ;;  %v2589_v12 = vpop.eup %2588  ;;  %v998_v6 = vld [vmem:[%s3703_s1 + $0x8] sm:$0xff]  ;;  %v1035_v61 = vld [vmem:[%s3703_s1 + $0x130] sm:$0xff] }
 0x31b   :  { %v3261_v25 = vpack.c.bf16 %v1002_v9, %v998_v6  ;;  %v3387_v63 = vpack.c.bf16 %v1035_v61, %v1031_v60  ;;  %v1052_v6 = vld [vmem:[%s3703_s1 + $0x1b8] sm:$0xff] }
 0x31c   :  { %v3244_v11 = vadd.f32 %v745_v1, %v744_v5  ;;  %v1040_v1 = vld [vmem:[%s3703_s1 + $0x158] sm:$0xff]  ;;  %v1039_v5 = vld [vmem:[%s3703_s1 + $0x150] sm:$0xff] }
 0x31d   :  { %2288 = vmatprep.subr.bf16.mxu0 %v3261_v25 }
 0x31e   :  { %2590 = vtanh.f32 %v3244_v11 }
 0x328   :  { %v2591_v13 = vpop.eup %2590 }
 0x329   :  { %v748_v8 = vmul.f32 %v2591_v13, %v2589_v12  ;;  %v3400_v12 = vpack.c.bf16 %v1044_v2, %v1040_v1  ;;  %v1043_v13 = vld [vmem:[%s3703_s1 + $0x170] sm:$0xff] }
 0x32a   :  { %v3413_v9 = vpack.c.bf16 %v1043_v13, %v1039_v5 }
 0x32b   :  { %1990 = vst [vmem:[%s3707_s4 + $0x10] sm:$0xff] %v748_v8  ;;  %885 = vmatmul.mubr.f32.vlgmr.msra.gmra.mrb[6].mxu0 %v748_v8  ;;  %956 = vmatmul.mubr.f32.vlgmr.msra.gmra.mrb[6].mxu1 %v748_v8  ;;  %v1048_v8 = vld [vmem:[%s3703_s1 + $0x198] sm:$0xff] }
 0x32c   :  { %1125 = vmatprep.mubr.f32.mxu0 %v2672_v3  ;;  %1196 = vmatprep.mubr.f32.mxu1 %v2672_v3  ;;  %v3416_v17 = vpack.c.bf16 %v1052_v6, %v1048_v8 }
 0x32d   :  { %2290 = vmatpush1.bf16.msra.mxu0 %v3274_v15  ;;  %2322 = vmatpush1.bf16.msra.mxu1 %v3283_v40 }
 0x32e   :  { %2292 = vmatprep.subr.bf16.mxu0 %v3297_v20  ;;  %2324 = vmatprep.subr.bf16.mxu1 %v3308_v35 }
 0x331   :  { %2294 = vmatpush1.bf16.msra.mxu0 %v3310_v43  ;;  %2326 = vmatpush1.bf16.msra.mxu1 %v3319_v30 }
 0x332   :  { %2296 = vmatprep.subr.bf16.mxu0 %v3333_v58  ;;  %2328 = vmatprep.subr.bf16.mxu1 %v3344_v27 }
 0x335   :  { %2298 = vmatpush1.bf16.msra.mxu0 %v3138_v14  ;;  %2330 = vmatpush1.bf16.msra.mxu1 %v3346_v4 }
 0x336   :  { %2300 = vmatprep.subr.bf16.mxu0 %v3147_v33  ;;  %2332 = vmatprep.subr.bf16.mxu1 %v3359_v50 }
 0x339   :  { %2302 = vmatpush1.bf16.msra.mxu0 %v3155_v48  ;;  %2334 = vmatpush1.bf16.msra.mxu1 %v3367_v54 }
 0x33a   :  { %2304 = vmatprep.subr.bf16.mxu0 %v3165_v0  ;;  %2336 = vmatprep.subr.bf16.mxu1 %v3379_v59 }
 0x33d   :  { %2306 = vmatpush1.bf16.msra.mxu0 %v3173_v31  ;;  %2338 = vmatpush1.bf16.msra.mxu1 %v3387_v63 }
 0x33e   :  { %2308 = vmatprep.subr.bf16.mxu0 %v3186_v49  ;;  %2340 = vmatprep.subr.bf16.mxu1 %v3400_v12 }
 0x341   :  { %2310 = vmatpush1.bf16.msra.mxu0 %v3197_v21  ;;  %2342 = vmatpush1.bf16.msra.mxu1 %v3413_v9 }
 0x342   :  { %2312 = vmatprep.subr.bf16.mxu0 %v3199_v23  ;;  %2344 = vmatprep.subr.bf16.mxu1 %v3416_v17 }
 0x345   :  { %2314 = vmatpush1.bf16.msra.mxu0 %v3215_v36  ;;  %2346 = vmatpush1.bf16.msra.mxu1 %v3433_v32 }
 0x346   :  { %2316 = vmatprep.subr.bf16.mxu0 %v3218_v38  ;;  %2348 = vmatprep.subr.bf16.mxu1 %v3436_v41 }
 0x349   :  { %2318 = vmatpush1.bf16.msra.mxu0 %v3227_v47  ;;  %2350 = vmatpush1.bf16.msra.mxu1 %v3447_v28 }
 0x34a   :  { %2352 = vmatprep.subr.bf16.mxu0 %v3261_v25  ;;  %2384 = vmatprep.subr.bf16.mxu1 %v3272_v62 }
 0x3fe   :  { %v886_v44 = vpop.f32.mrb[6].mxu0  ;;  %v957_v26 = vpop.f32.mrb[6].mxu1 }
 0x3ff   :  { %v962_v42 = vadd.f32 %v1991_v29, %v886_v44  ;;  %v888_v46 = vpop.f32.mrb[7].mxu0  ;;  %v959_v55 = vpop.f32.mrb[7].mxu1  ;;  %v964_v56 = vadd.f32 %v1993_v51, %v957_v26  ;;  %v2000_v29 = vld [vmem:[%s3705_s0 + $0x88] sm:$0xff] }
 0x400   :  { %v963_v7 = vadd.f32 %v1992_v34, %v888_v46  ;;  %v965_v39 = vadd.f32 %v1994_v22, %v959_v55 }
 0x401   :  { %v1995_v10 = vmul.f32 -1.442695, %v962_v42 }
 0x402   :  { %v1996_v24 = vmul.f32 -1.442695, %v963_v7  ;;  %v1997_v53 = vmul.f32 -1.442695, %v965_v39  ;;  %v2001_v39 = vld [vmem:[%s3705_s0 + $0x90] sm:$0xff] }
 0x403   :  { %2592 = vpow2.f32 %v1995_v10 }
 0x404   :  { %2594 = vpow2.f32 %v1996_v24  ;;  %v2002_v24 = vld [vmem:[%s3705_s0 + $0x98] sm:$0xff] }
 0x405   :  { %2596 = vpow2.f32 %v1997_v53 }
 0x406   :  { %2598 = vtanh.f32 %v964_v56 }
 0x40d   :  { %v2593_v57 = vpop.eup %2592 }
 0x40e   :  { %v2595_v60 = vpop.eup %2594  ;;  %v969_v61 = vadd.f32 1.0, %v2593_v57 }
 0x40f   :  { %v975_v1 = vadd.f32 1.0, %v2595_v60  ;;  %v2597_v2 = vpop.eup %2596 }
 0x410   :  { %2600 = vrcp.f32 %v969_v61  ;;  %v2599_v5 = vpop.eup %2598  ;;  %v982_v37 = vadd.f32 1.0, %v2597_v2 }
 0x411   :  { %2602 = vrcp.f32 %v975_v1 }
 0x412   :  { %2604 = vrcp.f32 %v982_v37 }
 0x41a   :  { %v2601_v13 = vpop.eup %2600 }
 0x41b   :  { %v2603_v8 = vpop.eup %2602  ;;  %v986_v6 = vmul.f32 %v2601_v13, %v2599_v5 }
 0x41c   :  { %v985_v45 = vmul.f32 %v2603_v8, %v3244_v11  ;;  %v2605_v18 = vpop.eup %2604  ;;  %v1999_v11 = vld [vmem:[%s3705_s0 + $0x80] sm:$0xff] }
 0x41e   :  { %v3467_v52 = vadd.f32 %v986_v6, %v985_v45 }
 0x420   :  { %2606 = vtanh.f32 %v3467_v52 }
 0x42a   :  { %v2607_v16 = vpop.eup %2606 }
 0x42b   :  { %v989_v19 = vmul.f32 %v2607_v16, %v2605_v18 }
 0x42d   :  { %1998 = vst [vmem:[%s3707_s4 + $0x18] sm:$0xff] %v989_v19  ;;  %1126 = vmatmul.mubr.f32.vlgmr.msra.gmra.mrb[8].mxu0 %v989_v19  ;;  %1197 = vmatmul.mubr.f32.vlgmr.msra.gmra.mrb[8].mxu1 %v989_v19 }
 0x42e   :  { %2354 = vmatpush1.bf16.msra.mxu0 %v3274_v15  ;;  %2386 = vmatpush1.bf16.msra.mxu1 %v3283_v40 }
 0x42f   :  { %2356 = vmatprep.subr.bf16.mxu0 %v3297_v20  ;;  %2388 = vmatprep.subr.bf16.mxu1 %v3308_v35 }
 0x430   :  { %1366 = vmatprep.mubr.f32.mxu0 %v2672_v3  ;;  %1437 = vmatprep.mubr.f32.mxu1 %v2672_v3 }
 0x432   :  { %2358 = vmatpush1.bf16.msra.mxu0 %v3310_v43  ;;  %2390 = vmatpush1.bf16.msra.mxu1 %v3319_v30 }
 0x433   :  { %2360 = vmatprep.subr.bf16.mxu0 %v3333_v58  ;;  %2392 = vmatprep.subr.bf16.mxu1 %v3344_v27 }
 0x436   :  { %2362 = vmatpush1.bf16.msra.mxu0 %v3138_v14  ;;  %2394 = vmatpush1.bf16.msra.mxu1 %v3346_v4 }
 0x437   :  { %2364 = vmatprep.subr.bf16.mxu0 %v3147_v33  ;;  %2396 = vmatprep.subr.bf16.mxu1 %v3359_v50 }
 0x43a   :  { %2366 = vmatpush1.bf16.msra.mxu0 %v3155_v48  ;;  %2398 = vmatpush1.bf16.msra.mxu1 %v3367_v54 }
 0x43b   :  { %2368 = vmatprep.subr.bf16.mxu0 %v3165_v0  ;;  %2400 = vmatprep.subr.bf16.mxu1 %v3379_v59 }
 0x43e   :  { %2370 = vmatpush1.bf16.msra.mxu0 %v3173_v31  ;;  %2402 = vmatpush1.bf16.msra.mxu1 %v3387_v63 }
 0x43f   :  { %2372 = vmatprep.subr.bf16.mxu0 %v3186_v49  ;;  %2404 = vmatprep.subr.bf16.mxu1 %v3400_v12 }
 0x442   :  { %2374 = vmatpush1.bf16.msra.mxu0 %v3197_v21  ;;  %2406 = vmatpush1.bf16.msra.mxu1 %v3413_v9 }
 0x443   :  { %2376 = vmatprep.subr.bf16.mxu0 %v3199_v23  ;;  %2408 = vmatprep.subr.bf16.mxu1 %v3416_v17 }
 0x446   :  { %2378 = vmatpush1.bf16.msra.mxu0 %v3215_v36  ;;  %2410 = vmatpush1.bf16.msra.mxu1 %v3433_v32 }
 0x447   :  { %2380 = vmatprep.subr.bf16.mxu0 %v3218_v38  ;;  %2412 = vmatprep.subr.bf16.mxu1 %v3436_v41 }
 0x44a   :  { %2382 = vmatpush1.bf16.msra.mxu0 %v3227_v47  ;;  %2414 = vmatpush1.bf16.msra.mxu1 %v3447_v28 }
 0x44b   :  { %2416 = vmatprep.subr.bf16.mxu0 %v3261_v25  ;;  %2448 = vmatprep.subr.bf16.mxu1 %v3272_v62 }
 0x500   :  { %v1127_v34 = vpop.f32.mrb[8].mxu0  ;;  %v1198_v44 = vpop.f32.mrb[8].mxu1 }
 0x501   :  { %v1203_v26 = vadd.f32 %v1999_v11, %v1127_v34  ;;  %v1129_v42 = vpop.f32.mrb[9].mxu0  ;;  %v1200_v46 = vpop.f32.mrb[9].mxu1  ;;  %v1205_v53 = vadd.f32 %v2001_v39, %v1198_v44 }
 0x502   :  { %v1204_v55 = vadd.f32 %v2000_v29, %v1129_v42  ;;  %v1206_v22 = vadd.f32 %v2002_v24, %v1200_v46 }
 0x503   :  { %v2003_v7 = vmul.f32 -1.442695, %v1203_v26 }
 0x504   :  { %v2004_v10 = vmul.f32 -1.442695, %v1204_v55  ;;  %v2005_v51 = vmul.f32 -1.442695, %v1206_v22 }
 0x505   :  { %2608 = vpow2.f32 %v2003_v7 }
 0x506   :  { %2610 = vpow2.f32 %v2004_v10 }
 0x507   :  { %2612 = vpow2.f32 %v2005_v51 }
 0x508   :  { %2614 = vtanh.f32 %v1205_v53 }
 0x50f   :  { %v2609_v56 = vpop.eup %2608 }
 0x510   :  { %v2611_v57 = vpop.eup %2610  ;;  %v1210_v60 = vadd.f32 1.0, %v2609_v56 }
 0x511   :  { %v1216_v61 = vadd.f32 1.0, %v2611_v57  ;;  %v2613_v1 = vpop.eup %2612  ;;  %v1769_v57 = vld [vmem:[%s3703_s1 + $0x188] sm:$0xff] }
 0x512   :  { %2616 = vrcp.f32 %v1210_v60  ;;  %v2615_v2 = vpop.eup %2614  ;;  %v1223_v6 = vadd.f32 1.0, %v2613_v1  ;;  %v1773_v60 = vld [vmem:[%s3703_s1 + $0x1a8] sm:$0xff] }
 0x513   :  { %2618 = vrcp.f32 %v1216_v61  ;;  %v2503_v1 = vpack.c.bf16 %v1773_v60, %v1769_v57 }
 0x514   :  { %2620 = vrcp.f32 %v1223_v6 }
 0x51c   :  { %v2617_v5 = vpop.eup %2616 }
 0x51d   :  { %v2619_v13 = vpop.eup %2618  ;;  %v1227_v8 = vmul.f32 %v2617_v5, %v2615_v2  ;;  %v1768_v2 = vld [vmem:[%s3703_s1 + $0x180] sm:$0xff] }
 0x51e   :  { %v1226_v37 = vmul.f32 %v2619_v13, %v3467_v52  ;;  %v2621_v18 = vpop.eup %2620  ;;  %v1772_v5 = vld [vmem:[%s3703_s1 + $0x1a0] sm:$0xff]  ;;  %v1777_v13 = vld [vmem:[%s3703_s1 + $0x1c8] sm:$0xff] }
 0x51f   :  { %v2505_v6 = vpack.c.bf16 %v1772_v5, %v1768_v2 }
 0x520   :  { %v3520_v45 = vadd.f32 %v1227_v8, %v1226_v37  ;;  %v1781_v8 = vld [vmem:[%s3703_s1 + $0x1e8] sm:$0xff] }
 0x521   :  { %v2507_v37 = vpack.c.bf16 %v1781_v8, %v1777_v13 }
 0x522   :  { %2622 = vtanh.f32 %v3520_v45 }
 0x52c   :  { %v2623_v16 = vpop.eup %2622 }
 0x52d   :  { %v1230_v19 = vmul.f32 %v2623_v16, %v2621_v18  ;;  %v1780_v18 = vld [vmem:[%s3703_s1 + $0x1e0] sm:$0xff] }
 0x52f   :  { %2006 = vst [vmem:[%s3707_s4 + $0x20] sm:$0xff] %v1230_v19  ;;  %1367 = vmatmul.mubr.f32.vlgmr.msra.gmra.mrb[10].mxu0 %v1230_v19  ;;  %1438 = vmatmul.mubr.f32.vlgmr.msra.gmra.mrb[10].mxu1 %v1230_v19  ;;  %v2015_v19 = vld [vmem:[%s3705_s0 + $0xc0] sm:$0xff] }
 0x530   :  { %2418 = vmatpush1.bf16.msra.mxu0 %v3274_v15  ;;  %2450 = vmatpush1.bf16.msra.mxu1 %v3283_v40 }
 0x531   :  { %2420 = vmatprep.subr.bf16.mxu0 %v3297_v20  ;;  %2452 = vmatprep.subr.bf16.mxu1 %v3308_v35 }
 0x532   :  { %1607 = vmatprep.mubr.f32.mxu0 %v2672_v3  ;;  %1678 = vmatprep.mubr.f32.mxu1 %v2672_v3 }
 0x534   :  { %2422 = vmatpush1.bf16.msra.mxu0 %v3310_v43  ;;  %2454 = vmatpush1.bf16.msra.mxu1 %v3319_v30 }
 0x535   :  { %2424 = vmatprep.subr.bf16.mxu0 %v3333_v58  ;;  %2456 = vmatprep.subr.bf16.mxu1 %v3344_v27 }
 0x538   :  { %2426 = vmatpush1.bf16.msra.mxu0 %v3138_v14  ;;  %2458 = vmatpush1.bf16.msra.mxu1 %v3346_v4  ;;  %v2007_v14 = vld [vmem:[%s3705_s0 + $0xa0] sm:$0xff] }
 0x539   :  { %2428 = vmatprep.subr.bf16.mxu0 %v3147_v33  ;;  %2460 = vmatprep.subr.bf16.mxu1 %v3359_v50  ;;  %v2008_v33 = vld [vmem:[%s3705_s0 + $0xa8] sm:$0xff] }
 0x53c   :  { %2430 = vmatpush1.bf16.msra.mxu0 %v3155_v48  ;;  %2462 = vmatpush1.bf16.msra.mxu1 %v3367_v54 }
 0x53d   :  { %2432 = vmatprep.subr.bf16.mxu0 %v3165_v0  ;;  %2464 = vmatprep.subr.bf16.mxu1 %v3379_v59 }
 0x540   :  { %2434 = vmatpush1.bf16.msra.mxu0 %v3173_v31  ;;  %2466 = vmatpush1.bf16.msra.mxu1 %v3387_v63 }
 0x541   :  { %2436 = vmatprep.subr.bf16.mxu0 %v3186_v49  ;;  %2468 = vmatprep.subr.bf16.mxu1 %v3400_v12 }
 0x544   :  { %2438 = vmatpush1.bf16.msra.mxu0 %v3197_v21  ;;  %2470 = vmatpush1.bf16.msra.mxu1 %v3413_v9 }
 0x545   :  { %2440 = vmatprep.subr.bf16.mxu0 %v3199_v23  ;;  %2472 = vmatprep.subr.bf16.mxu1 %v3416_v17 }
 0x548   :  { %2442 = vmatpush1.bf16.msra.mxu0 %v3215_v36  ;;  %2474 = vmatpush1.bf16.msra.mxu1 %v3433_v32 }
 0x549   :  { %2444 = vmatprep.subr.bf16.mxu0 %v3218_v38  ;;  %2476 = vmatprep.subr.bf16.mxu1 %v3436_v41 }
 0x54c   :  { %2446 = vmatpush1.bf16.msra.mxu0 %v3227_v47  ;;  %2478 = vmatpush1.bf16.msra.mxu1 %v3447_v28  ;;  %v2010_v47 = vld [vmem:[%s3705_s0 + $0xb8] sm:$0xff] }
 0x54d   :  { %2480 = vmatprep.subr.bf16.mxu0 %v3261_v25  ;;  %2512 = vmatprep.subr.bf16.mxu1 %v3272_v62  ;;  %v2009_v62 = vld [vmem:[%s3705_s0 + $0xb0] sm:$0xff] }
 0x602   :  { %v1368_v48 = vpop.f32.mrb[10].mxu0  ;;  %v1439_v0 = vpop.f32.mrb[10].mxu1 }
 0x603   :  { %v1444_v31 = vadd.f32 %v2007_v14, %v1368_v48  ;;  %v1370_v49 = vpop.f32.mrb[11].mxu0  ;;  %v1441_v21 = vpop.f32.mrb[11].mxu1  ;;  %v1446_v11 = vadd.f32 %v2009_v62, %v1439_v0  ;;  %v2016_v14 = vld [vmem:[%s3705_s0 + $0xc8] sm:$0xff] }
 0x604   :  { %v1445_v23 = vadd.f32 %v2008_v33, %v1370_v49  ;;  %v1447_v25 = vadd.f32 %v2010_v47, %v1441_v21 }
 0x605   :  { %v2011_v36 = vmul.f32 -1.442695, %v1444_v31 }
 0x606   :  { %v2012_v38 = vmul.f32 -1.442695, %v1445_v23  ;;  %v2013_v52 = vmul.f32 -1.442695, %v1447_v25  ;;  %v2017_v25 = vld [vmem:[%s3705_s0 + $0xd0] sm:$0xff] }
 0x607   :  { %2624 = vpow2.f32 %v2011_v36 }
 0x608   :  { %2626 = vpow2.f32 %v2012_v38  ;;  %v2018_v38 = vld [vmem:[%s3705_s0 + $0xd8] sm:$0xff] }
 0x609   :  { %2628 = vpow2.f32 %v2013_v52 }
 0x60a   :  { %2630 = vtanh.f32 %v1446_v11 }
 0x611   :  { %v2625_v29 = vpop.eup %2624 }
 0x612   :  { %v2627_v34 = vpop.eup %2626  ;;  %v1451_v44 = vadd.f32 1.0, %v2625_v29 }
 0x613   :  { %v1457_v26 = vadd.f32 1.0, %v2627_v34  ;;  %v2629_v42 = vpop.eup %2628 }
 0x614   :  { %2632 = vrcp.f32 %v1451_v44  ;;  %v2631_v46 = vpop.eup %2630  ;;  %v1464_v24 = vadd.f32 1.0, %v2629_v42 }
 0x615   :  { %2634 = vrcp.f32 %v1457_v26 }
 0x616   :  { %2636 = vrcp.f32 %v1464_v24 }
 0x61e   :  { %v2633_v55 = vpop.eup %2632 }
 0x61f   :  { %v2635_v7 = vpop.eup %2634  ;;  %v1468_v10 = vmul.f32 %v2633_v55, %v2631_v46 }
 0x620   :  { %v1467_v22 = vmul.f32 %v2635_v7, %v3520_v45  ;;  %v2637_v51 = vpop.eup %2636  ;;  %v1776_v45 = vld [vmem:[%s3703_s1 + $0x1c0] sm:$0xff] }
 0x621   :  { %v2509_v16 = vpack.c.bf16 %v1780_v18, %v1776_v45 }
 0x622   :  { %v3573_v39 = vadd.f32 %v1468_v10, %v1467_v22 }
 0x624   :  { %2638 = vtanh.f32 %v3573_v39 }
 0x62e   :  { %v2639_v53 = vpop.eup %2638 }
 0x62f   :  { %v1471_v56 = vmul.f32 %v2639_v53, %v2637_v51 }
 0x631   :  { %2014 = vst [vmem:[%s3707_s4 + $0x28] sm:$0xff] %v1471_v56  ;;  %1608 = vmatmul.mubr.f32.vlgmr.msra.gmra.mrb[12].mxu0 %v1471_v56  ;;  %1679 = vmatmul.mubr.f32.vlgmr.msra.gmra.mrb[12].mxu1 %v1471_v56 }
 0x632   :  { %2482 = vmatpush1.bf16.msra.mxu0 %v3274_v15  ;;  %2514 = vmatpush1.bf16.msra.mxu1 %v3283_v40  ;;  %v1740_v15 = vld [vmem:[%s3703_s1 + $0xa0] sm:$0xff] }
 0x633   :  { %2484 = vmatprep.subr.bf16.mxu0 %v3297_v20  ;;  %2516 = vmatprep.subr.bf16.mxu1 %v3308_v35  ;;  %v1745_v20 = vld [vmem:[%s3703_s1 + $0xc8] sm:$0xff] }
 0x634   :  { %1848 = vmatprep.mubr.f32.mxu0 %v2672_v3  ;;  %1919 = vmatprep.mubr.f32.mxu1 %v2672_v3  ;;  %v1736_v3 = vld [vmem:[%s3703_s1 + $0x80] sm:$0xff]  ;;  %v1749_v35 = vld [vmem:[%s3703_s1 + $0xe8] sm:$0xff] }
 0x635   :  { %v2489_v40 = vpack.c.bf16 %v1740_v15, %v1736_v3  ;;  %v2023_v3 = vld [vmem:[%s3705_s0 + $0xe0] sm:$0xff] }
 0x636   :  { %2486 = vmatpush1.bf16.msra.mxu0 %v3310_v43  ;;  %2518 = vmatpush1.bf16.msra.mxu1 %v3319_v30  ;;  %v2491_v43 = vpack.c.bf16 %v1749_v35, %v1745_v20  ;;  %v1744_v30 = vld [vmem:[%s3703_s1 + $0xc0] sm:$0xff] }
 0x637   :  { %2488 = vmatprep.subr.bf16.mxu0 %v3333_v58  ;;  %2520 = vmatprep.subr.bf16.mxu1 %v3344_v27  ;;  %v1748_v58 = vld [vmem:[%s3703_s1 + $0xe0] sm:$0xff] }
 0x638   :  { %v2493_v27 = vpack.c.bf16 %v1748_v58, %v1744_v30 }
 0x63a   :  { %2522 = vmatpush1.bf16.msra.mxu1 %v3346_v4  ;;  %2490 = vmatpush1.bf16.msra.mxu0 %v2489_v40  ;;  %v1753_v4 = vld [vmem:[%s3703_s1 + $0x108] sm:$0xff] }
 0x63b   :  { %2524 = vmatprep.subr.bf16.mxu1 %v3359_v50  ;;  %2492 = vmatprep.subr.bf16.mxu0 %v2491_v43  ;;  %v1757_v50 = vld [vmem:[%s3703_s1 + $0x128] sm:$0xff] }
 0x63e   :  { %2526 = vmatpush1.bf16.msra.mxu1 %v3367_v54  ;;  %2494 = vmatpush1.bf16.msra.mxu0 %v2493_v27  ;;  %v2495_v54 = vpack.c.bf16 %v1757_v50, %v1753_v4  ;;  %v2026_v4 = vld [vmem:[%s3705_s0 + $0xf8] sm:$0xff] }
 0x63f   :  { %2528 = vmatprep.subr.bf16.mxu1 %v3379_v59  ;;  %v1752_v59 = vld [vmem:[%s3703_s1 + $0x100] sm:$0xff] }
 0x640   :  { %2496 = vmatprep.subr.bf16.mxu0 %v2495_v54  ;;  %v2025_v54 = vld [vmem:[%s3705_s0 + $0xf0] sm:$0xff] }
 0x642   :  { %2530 = vmatpush1.bf16.msra.mxu1 %v3387_v63  ;;  %v1756_v63 = vld [vmem:[%s3703_s1 + $0x120] sm:$0xff] }
 0x643   :  { %2532 = vmatprep.subr.bf16.mxu1 %v3400_v12  ;;  %v2497_v12 = vpack.c.bf16 %v1756_v63, %v1752_v59 }
 0x645   :  { %2498 = vmatpush1.bf16.msra.mxu0 %v2497_v12 }
 0x646   :  { %2534 = vmatpush1.bf16.msra.mxu1 %v3413_v9  ;;  %v1761_v9 = vld [vmem:[%s3703_s1 + $0x148] sm:$0xff] }
 0x647   :  { %2536 = vmatprep.subr.bf16.mxu1 %v3416_v17  ;;  %v1765_v17 = vld [vmem:[%s3703_s1 + $0x168] sm:$0xff] }
 0x64a   :  { %2538 = vmatpush1.bf16.msra.mxu1 %v3433_v32  ;;  %v1760_v32 = vld [vmem:[%s3703_s1 + $0x140] sm:$0xff] }
 0x64b   :  { %2540 = vmatprep.subr.bf16.mxu1 %v3436_v41  ;;  %v2499_v41 = vpack.c.bf16 %v1765_v17, %v1761_v9 }
 0x64d   :  { %2500 = vmatprep.subr.bf16.mxu0 %v2499_v41 }
 0x64e   :  { %2542 = vmatpush1.bf16.msra.mxu1 %v3447_v28  ;;  %v1764_v28 = vld [vmem:[%s3703_s1 + $0x160] sm:$0xff] }
 0x64f   :  { %v2501_v61 = vpack.c.bf16 %v1764_v28, %v1760_v32 }
 0x651   :  { %2502 = vmatpush1.bf16.msra.mxu0 %v2501_v61 }
 0x652   :  { %2504 = vmatprep.subr.bf16.mxu0 %v2503_v1 }
 0x655   :  { %2506 = vmatpush1.bf16.msra.mxu0 %v2505_v6 }
 0x656   :  { %2508 = vmatprep.subr.bf16.mxu0 %v2507_v37 }
 0x659   :  { %2510 = vmatpush1.bf16.msra.mxu0 %v2509_v16 }
 0x704   :  { %v1609_v33 = vpop.f32.mrb[12].mxu0  ;;  %v1680_v48 = vpop.f32.mrb[12].mxu1 }
 0x705   :  { %v1685_v0 = vadd.f32 %v2015_v19, %v1609_v33  ;;  %v1611_v31 = vpop.f32.mrb[13].mxu0  ;;  %v1682_v49 = vpop.f32.mrb[13].mxu1  ;;  %v1687_v52 = vadd.f32 %v2017_v25, %v1680_v48 }
 0x706   :  { %v1686_v21 = vadd.f32 %v2016_v14, %v1611_v31  ;;  %v1688_v47 = vadd.f32 %v2018_v38, %v1682_v49 }
 0x707   :  { %v2019_v23 = vmul.f32 -1.442695, %v1685_v0 }
 0x708   :  { %v2020_v36 = vmul.f32 -1.442695, %v1686_v21  ;;  %v2021_v62 = vmul.f32 -1.442695, %v1688_v47 }
 0x709   :  { %2640 = vpow2.f32 %v2019_v23 }
 0x70a   :  { %2642 = vpow2.f32 %v2020_v36 }
 0x70b   :  { %2644 = vpow2.f32 %v2021_v62 }
 0x70c   :  { %2646 = vtanh.f32 %v1687_v52 }
 0x713   :  { %v2641_v11 = vpop.eup %2640 }
 0x714   :  { %v2643_v29 = vpop.eup %2642  ;;  %v1692_v34 = vadd.f32 1.0, %v2641_v11 }
 0x715   :  { %v1698_v44 = vadd.f32 1.0, %v2643_v29  ;;  %v2645_v26 = vpop.eup %2644 }
 0x716   :  { %2648 = vrcp.f32 %v1692_v34  ;;  %v2647_v42 = vpop.eup %2646  ;;  %v1705_v10 = vadd.f32 1.0, %v2645_v26 }
 0x717   :  { %2650 = vrcp.f32 %v1698_v44 }
 0x718   :  { %2652 = vrcp.f32 %v1705_v10 }
 0x720   :  { %v2649_v46 = vpop.eup %2648 }
 0x721   :  { %v2651_v55 = vpop.eup %2650  ;;  %v1709_v7 = vmul.f32 %v2649_v46, %v2647_v42 }
 0x722   :  { %v1708_v24 = vmul.f32 %v2651_v55, %v3573_v39  ;;  %v2653_v51 = vpop.eup %2652  ;;  %v2024_v39 = vld [vmem:[%s3705_s0 + $0xe8] sm:$0xff] }
 0x724   :  { %v1710_v22 = vadd.f32 %v1709_v7, %v1708_v24 }
 0x726   :  { %2654 = vtanh.f32 %v1710_v22 }
 0x730   :  { %v2655_v53 = vpop.eup %2654 }
 0x731   :  { %v1712_v56 = vmul.f32 %v2655_v53, %v2653_v51 }
 0x733   :  { %2022 = vst [vmem:[%s3707_s4 + $0x30] sm:$0xff] %v1712_v56  ;;  %1849 = vmatmul.mubr.f32.vlgmr.msra.gmra.mrb[14].mxu0 %v1712_v56  ;;  %1920 = vmatmul.mubr.f32.vlgmr.msra.gmra.mrb[14].mxu1 %v1712_v56 }
 0x806   :  { %v1850_v15 = vpop.f32.mrb[14].mxu0  ;;  %v1921_v40 = vpop.f32.mrb[14].mxu1 }
 0x807   :  { %v1926_v20 = vadd.f32 %v2023_v3, %v1850_v15  ;;  %v1852_v35 = vpop.f32.mrb[15].mxu0  ;;  %v1923_v43 = vpop.f32.mrb[15].mxu1  ;;  %v1928_v63 = vadd.f32 %v2025_v54, %v1921_v40 }
 0x808   :  { %v1927_v30 = vadd.f32 %v2024_v39, %v1852_v35  ;;  %v1929_v50 = vadd.f32 %v2026_v4, %v1923_v43 }
 0x809   :  { %v2027_v58 = vmul.f32 -1.442695, %v1926_v20 }
 0x80a   :  { %v2028_v27 = vmul.f32 -1.442695, %v1927_v30  ;;  %v2029_v59 = vmul.f32 -1.442695, %v1929_v50 }
 0x80b   :  { %2656 = vpow2.f32 %v2027_v58 }
 0x80c   :  { %2658 = vpow2.f32 %v2028_v27 }
 0x80d   :  { %2660 = vpow2.f32 %v2029_v59 }
 0x80e   :  { %2662 = vtanh.f32 %v1928_v63 }
 0x815   :  { %v2657_v12 = vpop.eup %2656 }
 0x816   :  { %v2659_v9 = vpop.eup %2658  ;;  %v1933_v17 = vadd.f32 1.0, %v2657_v12 }
 0x817   :  { %v1939_v32 = vadd.f32 1.0, %v2659_v9  ;;  %v2661_v41 = vpop.eup %2660 }
 0x818   :  { %2664 = vrcp.f32 %v1933_v17  ;;  %v2663_v28 = vpop.eup %2662  ;;  %v1946_v1 = vadd.f32 1.0, %v2661_v41 }
 0x819   :  { %2666 = vrcp.f32 %v1939_v32 }
 0x81a   :  { %2668 = vrcp.f32 %v1946_v1 }
 0x822   :  { %v2665_v57 = vpop.eup %2664 }
 0x823   :  { %v2667_v60 = vpop.eup %2666  ;;  %v1950_v61 = vmul.f32 %v2665_v57, %v2663_v28 }
 0x824   :  { %v1949_v2 = vmul.f32 %v2667_v60, %v1710_v22  ;;  %v2669_v13 = vpop.eup %2668 }
 0x826   :  { %v1951_v5 = vadd.f32 %v1950_v61, %v1949_v2 }
 0x828   :  { %2670 = vtanh.f32 %v1951_v5  ;;  %1959 = vst [vmem:[%s3708_s6] sm:$0xff] %v1951_v5 }
 0x832   :  { %v2671_v8 = vpop.eup %2670 }
 0x833   :  { %v1953_v6 = vmul.f32 %v2671_v8, %v2669_v13 }
 0x835   :  { %2030 = vst [vmem:[%s3707_s4 + $0x38] sm:$0xff] %v1953_v6  ;;  %1958 = vst [vmem:[%s3709_s5] sm:$0xff] %v1953_v6 }

</bundles_post_ra>
